<compile_context>
chip_gen: v7x
topology: tpu7x:2x2x1
jax: 0.10.0
libtpu: 0.0.40
codegen_flags: <defaults>
</compile_context>

<pallas_src>
import jax
import jax.numpy as jnp
from jax.experimental import pallas as pl
from jax.experimental.pallas import tpu as pltpu

_LANES = 128       # vreg lane width
_BF16_ROWS = 16    # bf16 sublane packing: 2nd-to-last block dim multiple


def _round_up(x, m):
    return (x + m - 1) // m * m


# ---------------------------------------------------------------------------
# Chip queries (perf decisions only; safe fallbacks if unavailable).
# ---------------------------------------------------------------------------
def _vmem_limit_bytes():
    cap = 64 * 1024 * 1024              # safe lower bound (v7x per-TC VMEM)
    try:
        info = pltpu.get_tpu_info()
        cap = int(getattr(info, "vmem_capacity_bytes", cap))
    except Exception:
        pass
    return int(0.8 * cap)               # headroom for compiler internal scratch


def _num_tensorcores():
    try:
        info = pltpu.get_tpu_info()
    except Exception:
        return 1
    for name in ("num_cores", "cores_per_chip", "core_count",
                 "tensorcore_count", "num_tensorcores"):
        v = getattr(info, name, None)
        if isinstance(v, int) and v > 0:
            return v
    return 1


# ---------------------------------------------------------------------------
# Kernel
# ---------------------------------------------------------------------------
def _discriminator_kernel(x_ref,
                          w1_ref, b1_ref,
                          w2_ref, b2_ref,
                          w3_ref, b3_ref,
                          w4_ref, b4_ref,
                          o_ref, acc_ref):
    """Layer-1 partials accumulated in f32; layers 2-4 + sigmoid on last K step."""
    k = pl.program_id(1)

    @pl.when(k == 0)
    def _init():
        acc_ref[...] = jnp.zeros_like(acc_ref)

    # x / w1 are already bf16 (MXU fast path); accumulate layer 1 in f32.
    acc_ref[...] += jnp.dot(x_ref[...], w1_ref[...],
                            preferred_element_type=jnp.float32)

    @pl.when(k == pl.num_programs(1) - 1)
    def _epilogue():
        h = jnp.maximum(acc_ref[...] + b1_ref[...], 0.0).astype(jnp.bfloat16)
        h = jnp.dot(h, w2_ref[...], preferred_element_type=jnp.float32) + b2_ref[...]
        h = jnp.maximum(h, 0.0).astype(jnp.bfloat16)
        h = jnp.dot(h, w3_ref[...], preferred_element_type=jnp.float32) + b3_ref[...]
        h = jnp.maximum(h, 0.0).astype(jnp.bfloat16)
        h = jnp.dot(h, w4_ref[...], preferred_element_type=jnp.float32) + b4_ref[...]
        o_ref[...] = jax.nn.sigmoid(h).astype(o_ref.dtype)


# ---------------------------------------------------------------------------
# One-time parameter preparation (cached; NOT per forward call)
# ---------------------------------------------------------------------------
def prepare_discriminator(params, *, tm=256, _force_tk=None):
    """Convert PyTorch-layout params into kernel-ready arrays + static launch plan.

    params: dict with "w1".."w4" stored as [in, out] (= W.T) and "b1".."b4" as
    [1, out], all float32.  Call once and reuse the result across forward calls.
    """
    n_items = params["w1"].shape[0]
    tile_m = max(_BF16_ROWS, _round_up(tm, _BF16_ROWS))

    vmem_limit = _vmem_limit_bytes()
    num_cores = _num_tensorcores()

    # VMEM residents that do not scale with itemCount (bytes).
    fixed = (tile_m * 1024 * 4                 # layer-1 f32 accumulator scratch
             + 1024 * 128 * 2                  # w2 (bf16, single buffered)
             + 2 * 128 * 128 * 2               # w3, w4
             + (1024 + 3 * 128) * 4            # biases (f32)
             + 2 * tile_m * _LANES * 4         # double-buffered output tile
             + (2 << 20))                      # slack
    avail = max(vmem_limit - fixed, 4 << 20)

    # Fused single pass: w1 fully resident (1 copy) + 2 x-tiles in flight.
    max_resident_k = avail // (1024 * 2 + 2 * tile_m * 2)

    if _force_tk is not None:                  # test hook for the K-split path
        assert _force_tk % _LANES == 0
        tk = _force_tk
    elif n_items <= max_resident_k:
        tk = n_items                           # one K step, x never padded on K
    else:
        # K-split: 2 (tk,1024) w1 slabs + 2 (tile_m,tk) x tiles in flight.
        tk = avail // (2 * 1024 * 2 + 2 * tile_m * 2)
        tk = max(512, min(8192, tk // _LANES * _LANES))

    item_p = _round_up(n_items, tk)
    grid_k = item_p // tk

    w1 = params["w1"]
    if item_p != n_items:                      # only padded in the K-split case
        w1 = jnp.pad(w1, ((0, item_p - n_items), (0, 0)))

    return {
        "w1": w1.astype(jnp.bfloat16),
        "b1": params["b1"].astype(jnp.float32),
        "w2": params["w2"].astype(jnp.bfloat16),
        "b2": params["b2"].astype(jnp.float32),
        "w3": jnp.pad(params["w3"], ((0, 0), (0, _LANES - 16))).astype(jnp.bfloat16),
        "b3": jnp.pad(params["b3"], ((0, 0), (0, _LANES - 16))).astype(jnp.float32),
        "w4": jnp.pad(params["w4"], ((0, _LANES - 16), (0, _LANES - 1))).astype(jnp.bfloat16),
        "b4": jnp.pad(params["b4"], ((0, 0), (0, _LANES - 1))).astype(jnp.float32),
        "n_items": n_items, "item_p": item_p, "tk": tk, "grid_k": grid_k,
        "tile_m": tile_m, "num_cores": num_cores, "vmem_limit": vmem_limit,
    }


def _const_spec(shape):
    """Grid-invariant block: one resident VMEM copy (no double buffering)."""
    return pl.BlockSpec(shape, lambda i, k: (0,) * len(shape),
                        pipeline_mode=pl.Buffered(1))


# ---------------------------------------------------------------------------
# Forward
# ---------------------------------------------------------------------------
def discriminator_forward(data, prep):
    """data: [B, itemCount] float. Returns sigmoid outputs [B, 1] f32."""
    batch, n_items = data.shape
    assert n_items == prep["n_items"]
    item_p, tk, grid_k = prep["item_p"], prep["tk"], prep["grid_k"]

    # ---- batch tiling (bf16 tiles -> multiples of 16 rows) -------------------
    tile_m = min(prep["tile_m"], _round_up(batch, _BF16_ROWS))
    # Split a single big tile in two only when >1 TensorCore can use it (v7x);
    # on 1-TC chips (v5e/v6e) keep the tile whole so the MXU M-dim stays full.
    if (prep["num_cores"] >= 2 and tile_m >= 2 * _BF16_ROWS
            and _round_up(batch, tile_m) // tile_m < 2):
        tile_m = _round_up(-(-batch // 2), _BF16_ROWS)
    bp = _round_up(batch, tile_m)
    grid_m = bp // tile_m

    # Only streamed tensor: cast to bf16 up front (halves its HBM DMA bytes).
    x = data.astype(jnp.bfloat16)
    if bp != batch or item_p != n_items:
        x = jnp.pad(x, ((0, bp - batch), (0, item_p - n_items)))

    if grid_k == 1:
        # Grid-invariant w1 -> single resident copy.
        w1_spec = pl.BlockSpec((tk, 1024), lambda i, k: (k, 0),
                               pipeline_mode=pl.Buffered(1))
    else:
        # Streamed (double-buffered) w1 slabs along K.
        w1_spec = pl.BlockSpec((tk, 1024), lambda i, k: (k, 0))

    out_padded = pl.pallas_call(
        _discriminator_kernel,
        out_shape=jax.ShapeDtypeStruct((bp, _LANES), jnp.float32),
        grid_spec=pltpu.PrefetchScalarGridSpec(
            num_scalar_prefetch=0,
            grid=(grid_m, grid_k),
            in_specs=[
                pl.BlockSpec((tile_m, tk), lambda i, k: (i, k)),   # x tile
                w1_spec,
                _const_spec(prep["b1"].shape),
                _const_spec(prep["w2"].shape), _const_spec(prep["b2"].shape),
                _const_spec(prep["w3"].shape), _const_spec(prep["b3"].shape),
                _const_spec(prep["w4"].shape), _const_spec(prep["b4"].shape),
            ],
            out_specs=pl.BlockSpec((tile_m, _LANES), lambda i, k: (i, 0)),
            scratch_shapes=[pltpu.VMEM((tile_m, 1024), jnp.float32)],
        ),
        compiler_params=pltpu.CompilerParams(
            dimension_semantics=("parallel", "arbitrary"),
            vmem_limit_bytes=prep["vmem_limit"],
        ),
    )(x, prep["w1"], prep["b1"], prep["w2"], prep["b2"],
      prep["w3"], prep["b3"], prep["w4"], prep["b4"])

    # Drop batch padding and the 127 padded output lanes -> [B, 1].
    return out_padded[:batch, :1]


# ---------------------------------------------------------------------------
# Init + reference (for the self-test)
# ---------------------------------------------------------------------------
def init_params(key, item_count):
    """PyTorch nn.Linear-style uniform init; weights stored as [in, out] (= W.T)."""
    dims = [(item_count, 1024), (1024, 128), (128, 16), (16, 1)]
    params = {}
    for idx, (fan_in, fan_out) in enumerate(dims, start=1):
        key, kw, kb = jax.random.split(key, 3)
        bound = 1.0 / jnp.sqrt(fan_in)
        params[f"w{idx}"] = jax.random.uniform(
            kw, (fan_in, fan_out), jnp.float32, -bound, bound)
        params[f"b{idx}"] = jax.random.uniform(
            kb, (1, fan_out), jnp.float32, -bound, bound)
    return params


def _reference_forward(data, params):
    h = jnp.maximum(data @ params["w1"] + params["b1"], 0.0)
    h = jnp.maximum(h @ params["w2"] + params["b2"], 0.0)
    h = jnp.maximum(h @ params["w3"] + params["b3"], 0.0)
    return jax.nn.sigmoid(h @ params["w4"] + params["b4"])


if __name__ == "__main__":
    key = jax.random.PRNGKey(0)
    batch = 64
    item_count = 200   # deliberately not a multiple of 128 -> unpadded-K path

    key, kdata = jax.random.split(key)
    data = jax.random.normal(kdata, (batch, item_count), jnp.float32)
    params = init_params(key, item_count)
    ref = _reference_forward(data, params)

    # Path 1: fused single K pass (w1 fully VMEM-resident, x unpadded on K).
    prep = prepare_discriminator(params)
    out = jax.block_until_ready(discriminator_forward(data, prep))
    assert out.shape == (batch, 1)
    err = float(jnp.max(jnp.abs(out - ref)))
    assert err < 2e-2, f"fused path max abs err {err}"   # bf16 matmuls, f32 acc

    # Path 2: K-split over itemCount (large-itemCount / v7x path), forced small.
    prep_split = prepare_discriminator(params, _force_tk=128)
    out2 = jax.block_until_ready(discriminator_forward(data, prep_split))
    err2 = float(jnp.max(jnp.abs(out2 - ref)))
    assert err2 < 2e-2, f"k-split path max abs err {err2}"

    print("KERNEL_OK")
</pallas_src>

<mosaic_0001>
module attributes {stable_mosaic.version = 11 : i64} {
  func.func @_discriminator_kernel(%arg0: i32, %arg1: i32, %arg2: memref<64x200xbf16, #tpu.memory_space<vmem>>, %arg3: memref<200x1024xbf16, #tpu.memory_space<vmem>>, %arg4: memref<1x1024xf32, #tpu.memory_space<vmem>>, %arg5: memref<1024x128xbf16, #tpu.memory_space<vmem>>, %arg6: memref<1x128xf32, #tpu.memory_space<vmem>>, %arg7: memref<128x128xbf16, #tpu.memory_space<vmem>>, %arg8: memref<1x128xf32, #tpu.memory_space<vmem>>, %arg9: memref<128x128xbf16, #tpu.memory_space<vmem>>, %arg10: memref<1x128xf32, #tpu.memory_space<vmem>>, %arg11: memref<64x128xf32, #tpu.memory_space<vmem>>, %arg12: memref<64x1024xf32, #tpu.memory_space<vmem>>) attributes {dimension_semantics = [#tpu.dimension_semantics<parallel>, #tpu.dimension_semantics<arbitrary>], iteration_bounds = array<i64: 1, 1>, scalar_prefetch = 0 : i64, scratch_operands = 1 : i64, tpu.core_type = #tpu.core_type<tc>, window_params = [{transform_indices = @transform_0, window_bounds = array<i64: 64, 200>}, {pipeline_mode = #tpu.pipeline_mode<synchronous>, transform_indices = @transform_1, window_bounds = array<i64: 200, 1024>}, {pipeline_mode = #tpu.pipeline_mode<synchronous>, transform_indices = @transform_2, window_bounds = array<i64: 1, 1024>}, {pipeline_mode = #tpu.pipeline_mode<synchronous>, transform_indices = @transform_3, window_bounds = array<i64: 1024, 128>}, {pipeline_mode = #tpu.pipeline_mode<synchronous>, transform_indices = @transform_4, window_bounds = array<i64: 1, 128>}, {pipeline_mode = #tpu.pipeline_mode<synchronous>, transform_indices = @transform_5, window_bounds = array<i64: 128, 128>}, {pipeline_mode = #tpu.pipeline_mode<synchronous>, transform_indices = @transform_6, window_bounds = array<i64: 1, 128>}, {pipeline_mode = #tpu.pipeline_mode<synchronous>, transform_indices = @transform_7, window_bounds = array<i64: 128, 128>}, {pipeline_mode = #tpu.pipeline_mode<synchronous>, transform_indices = @transform_8, window_bounds = array<i64: 1, 128>}, {transform_indices = @transform_9, window_bounds = array<i64: 64, 128>}]} {
    %c0_i32 = arith.constant 0 : i32
    %0 = arith.cmpi eq, %arg1, %c0_i32 : i32
    %1 = arith.extui %0 : i1 to i32
    %c0_i32_0 = arith.constant 0 : i32
    %2 = arith.cmpi ne, %1, %c0_i32_0 : i32
    scf.if %2 {
      %cst_10 = arith.constant 0.000000e+00 : f32
      %12 = vector.broadcast %cst_10 : f32 to vector<64x1024xf32>
      %c0_11 = arith.constant 0 : index
      %c0_12 = arith.constant 0 : index
      %13 = vector.load %arg12[%c0_11, %c0_12] : memref<64x1024xf32, #tpu.memory_space<vmem>>, vector<64x1024xf32>
      tpu.vector_store %arg12[%c0_11, %c0_12], %12 {strides = array<i32>} : memref<64x1024xf32, #tpu.memory_space<vmem>>, vector<64x1024xf32>,
    } else {
    }
    %c0 = arith.constant 0 : index
    %c0_1 = arith.constant 0 : index
    %3 = vector.load %arg12[%c0, %c0_1] : memref<64x1024xf32, #tpu.memory_space<vmem>>, vector<64x1024xf32>
    %c0_2 = arith.constant 0 : index
    %c0_3 = arith.constant 0 : index
    %4 = vector.load %arg2[%c0_2, %c0_3] : memref<64x200xbf16, #tpu.memory_space<vmem>>, vector<64x200xbf16>
    %c0_4 = arith.constant 0 : index
    %c0_5 = arith.constant 0 : index
    %5 = vector.load %arg3[%c0_4, %c0_5] : memref<200x1024xbf16, #tpu.memory_space<vmem>>, vector<200x1024xbf16>
    %cst = arith.constant dense<0.000000e+00> : vector<64x1024xf32>
    %6 = tpu.matmul %4, %5, %cst {dimension_numbers = #tpu.dot_dimension_numbers<[1], [0], [0], [1], [0, 0, 1, 1], [], []>} : vector<64x200xbf16>, vector<200x1024xbf16>, vector<64x1024xf32> -> vector<64x1024xf32>
    %7 = arith.addf %3, %6 : vector<64x1024xf32>
    %c0_6 = arith.constant 0 : index
    %c0_7 = arith.constant 0 : index
    %8 = vector.load %arg12[%c0_6, %c0_7] : memref<64x1024xf32, #tpu.memory_space<vmem>>, vector<64x1024xf32>
    tpu.vector_store %arg12[%c0_6, %c0_7], %7 {strides = array<i32>} : memref<64x1024xf32, #tpu.memory_space<vmem>>, vector<64x1024xf32>,
    %c0_i32_8 = arith.constant 0 : i32
    %9 = arith.cmpi eq, %arg1, %c0_i32_8 : i32
    %10 = arith.extui %9 : i1 to i32
    %c0_i32_9 = arith.constant 0 : i32
    %11 = arith.cmpi ne, %10, %c0_i32_9 : i32
    scf.if %11 {
      %c0_10 = arith.constant 0 : index
      %c0_11 = arith.constant 0 : index
      %12 = vector.load %arg12[%c0_10, %c0_11] : memref<64x1024xf32, #tpu.memory_space<vmem>>, vector<64x1024xf32>
      %c0_12 = arith.constant 0 : index
      %c0_13 = arith.constant 0 : index
      %13 = vector.load %arg4[%c0_12, %c0_13] : memref<1x1024xf32, #tpu.memory_space<vmem>>, vector<1x1024xf32>
      %14 = vector.broadcast %13 : vector<1x1024xf32> to vector<64x1024xf32>
      %15 = arith.addf %12, %14 : vector<64x1024xf32>
      %cst_14 = arith.constant 0.000000e+00 : f32
      %16 = vector.broadcast %cst_14 : f32 to vector<64x1024xf32>
      %17 = arith.maximumf %15, %16 : vector<64x1024xf32>
      %18 = arith.truncf %17 : vector<64x1024xf32> to vector<64x1024xbf16>
      %c0_15 = arith.constant 0 : index
      %c0_16 = arith.constant 0 : index
      %19 = vector.load %arg5[%c0_15, %c0_16] : memref<1024x128xbf16, #tpu.memory_space<vmem>>, vector<1024x128xbf16>
      %cst_17 = arith.constant dense<0.000000e+00> : vector<64x128xf32>
      %20 = tpu.matmul %18, %19, %cst_17 {dimension_numbers = #tpu.dot_dimension_numbers<[1], [0], [0], [1], [0, 0, 1, 1], [], []>} : vector<64x1024xbf16>, vector<1024x128xbf16>, vector<64x128xf32> -> vector<64x128xf32>
      %c0_18 = arith.constant 0 : index
      %c0_19 = arith.constant 0 : index
      %21 = vector.load %arg6[%c0_18, %c0_19] : memref<1x128xf32, #tpu.memory_space<vmem>>, vector<1x128xf32>
      %22 = vector.broadcast %21 : vector<1x128xf32> to vector<64x128xf32>
      %23 = arith.addf %20, %22 : vector<64x128xf32>
      %cst_20 = arith.constant 0.000000e+00 : f32
      %24 = vector.broadcast %cst_20 : f32 to vector<64x128xf32>
      %25 = arith.maximumf %23, %24 : vector<64x128xf32>
      %26 = arith.truncf %25 : vector<64x128xf32> to vector<64x128xbf16>
      %c0_21 = arith.constant 0 : index
      %c0_22 = arith.constant 0 : index
      %27 = vector.load %arg7[%c0_21, %c0_22] : memref<128x128xbf16, #tpu.memory_space<vmem>>, vector<128x128xbf16>
      %cst_23 = arith.constant dense<0.000000e+00> : vector<64x128xf32>
      %28 = tpu.matmul %26, %27, %cst_23 {dimension_numbers = #tpu.dot_dimension_numbers<[1], [0], [0], [1], [0, 0, 1, 1], [], []>} : vector<64x128xbf16>, vector<128x128xbf16>, vector<64x128xf32> -> vector<64x128xf32>
      %c0_24 = arith.constant 0 : index
      %c0_25 = arith.constant 0 : index
      %29 = vector.load %arg8[%c0_24, %c0_25] : memref<1x128xf32, #tpu.memory_space<vmem>>, vector<1x128xf32>
      %30 = vector.broadcast %29 : vector<1x128xf32> to vector<64x128xf32>
      %31 = arith.addf %28, %30 : vector<64x128xf32>
      %cst_26 = arith.constant 0.000000e+00 : f32
      %32 = vector.broadcast %cst_26 : f32 to vector<64x128xf32>
      %33 = arith.maximumf %31, %32 : vector<64x128xf32>
      %34 = arith.truncf %33 : vector<64x128xf32> to vector<64x128xbf16>
      %c0_27 = arith.constant 0 : index
      %c0_28 = arith.constant 0 : index
      %35 = vector.load %arg9[%c0_27, %c0_28] : memref<128x128xbf16, #tpu.memory_space<vmem>>, vector<128x128xbf16>
      %cst_29 = arith.constant dense<0.000000e+00> : vector<64x128xf32>
      %36 = tpu.matmul %34, %35, %cst_29 {dimension_numbers = #tpu.dot_dimension_numbers<[1], [0], [0], [1], [0, 0, 1, 1], [], []>} : vector<64x128xbf16>, vector<128x128xbf16>, vector<64x128xf32> -> vector<64x128xf32>
      %c0_30 = arith.constant 0 : index
      %c0_31 = arith.constant 0 : index
      %37 = vector.load %arg10[%c0_30, %c0_31] : memref<1x128xf32, #tpu.memory_space<vmem>>, vector<1x128xf32>
      %38 = vector.broadcast %37 : vector<1x128xf32> to vector<64x128xf32>
      %39 = arith.addf %36, %38 : vector<64x128xf32>
      %40 = arith.negf %39 : vector<64x128xf32>
      %41 = math.exp %40 : vector<64x128xf32>
      %cst_32 = arith.constant 1.000000e+00 : f32
      %42 = vector.broadcast %cst_32 : f32 to vector<64x128xf32>
      %43 = arith.addf %42, %41 : vector<64x128xf32>
      %44 = arith.divf %42, %43 : vector<64x128xf32>
      %c0_33 = arith.constant 0 : index
      %c0_34 = arith.constant 0 : index
      %45 = vector.load %arg11[%c0_33, %c0_34] : memref<64x128xf32, #tpu.memory_space<vmem>>, vector<64x128xf32>
      tpu.vector_store %arg11[%c0_33, %c0_34], %44 {strides = array<i32>} : memref<64x128xf32, #tpu.memory_space<vmem>>, vector<64x128xf32>,
    } else {
    }
    return
  }
  func.func @transform_0(%arg0: i32, %arg1: i32) -> (i32, i32) {
    %c0_i32 = arith.constant 0 : i32
    return %arg0, %arg1 : i32, i32
  }
  func.func @transform_1(%arg0: i32, %arg1: i32) -> (i32, i32) {
    %c0_i32 = arith.constant 0 : i32
    %c0_i32_0 = arith.constant 0 : i32
    return %arg1, %c0_i32 : i32, i32
  }
  func.func @transform_2(%arg0: i32, %arg1: i32) -> (i32, i32) {
    %c0_i32 = arith.constant 0 : i32
    %c0_i32_0 = arith.constant 0 : i32
    %c0_i32_1 = arith.constant 0 : i32
    return %c0_i32, %c0_i32_0 : i32, i32
  }
  func.func @transform_3(%arg0: i32, %arg1: i32) -> (i32, i32) {
    %c0_i32 = arith.constant 0 : i32
    %c0_i32_0 = arith.constant 0 : i32
    %c0_i32_1 = arith.constant 0 : i32
    return %c0_i32, %c0_i32_0 : i32, i32
  }
  func.func @transform_4(%arg0: i32, %arg1: i32) -> (i32, i32) {
    %c0_i32 = arith.constant 0 : i32
    %c0_i32_0 = arith.constant 0 : i32
    %c0_i32_1 = arith.constant 0 : i32
    return %c0_i32, %c0_i32_0 : i32, i32
  }
  func.func @transform_5(%arg0: i32, %arg1: i32) -> (i32, i32) {
    %c0_i32 = arith.constant 0 : i32
    %c0_i32_0 = arith.constant 0 : i32
    %c0_i32_1 = arith.constant 0 : i32
    return %c0_i32, %c0_i32_0 : i32, i32
  }
  func.func @transform_6(%arg0: i32, %arg1: i32) -> (i32, i32) {
    %c0_i32 = arith.constant 0 : i32
    %c0_i32_0 = arith.constant 0 : i32
    %c0_i32_1 = arith.constant 0 : i32
    return %c0_i32, %c0_i32_0 : i32, i32
  }
  func.func @transform_7(%arg0: i32, %arg1: i32) -> (i32, i32) {
    %c0_i32 = arith.constant 0 : i32
    %c0_i32_0 = arith.constant 0 : i32
    %c0_i32_1 = arith.constant 0 : i32
    return %c0_i32, %c0_i32_0 : i32, i32
  }
  func.func @transform_8(%arg0: i32, %arg1: i32) -> (i32, i32) {
    %c0_i32 = arith.constant 0 : i32
    %c0_i32_0 = arith.constant 0 : i32
    %c0_i32_1 = arith.constant 0 : i32
    return %c0_i32, %c0_i32_0 : i32, i32
  }
  func.func @transform_9(%arg0: i32, %arg1: i32) -> (i32, i32) {
    %c0_i32 = arith.constant 0 : i32
    %c0_i32_0 = arith.constant 0 : i32
    return %arg0, %c0_i32 : i32, i32
  }
}

</mosaic_0001>

<bundles_post_ra>
// kernel: tpu_custom_call.1
= control target key start
LH: loop header
LB: loop body
LE: loop exit
PB: predicated region body
PF: predicated region fallthrough
CT: control target
= control target key end

     0   :  { %14 = vsyncpa [#allocation4], 0  ;;  %s3893_s0 = inlined_call_operand.hbm [shape: bf16[64,200], index: 0, kind: input, shape index: {}]   ;;  %s3894_s1 = inlined_call_operand.hbm [shape: bf16[200,1024], index: 1, kind: input, shape index: {}]   ;;  %s3895_s2 = inlined_call_operand.hbm [shape: f32[1,1024], index: 2, kind: input, shape index: {}]   ;;  %s3896_s3 = inlined_call_operand.hbm [shape: bf16[1024,128], index: 3, kind: input, shape index: {}]   ;;  %s3897_s4 = inlined_call_operand.vmem [shape: f32[1,128], index: 4, kind: input, shape index: {}]   ;;  %s3898_s5 = inlined_call_operand.hbm [shape: bf16[128,128], index: 5, kind: input, shape index: {}]   ;;  %s3899_s6 = inlined_call_operand.vmem [shape: f32[1,128], index: 6, kind: input, shape index: {}]   ;;  %s3900_s7 = inlined_call_operand.hbm [shape: bf16[128,128], index: 7, kind: input, shape index: {}]   ;;  %s3901_s8 = inlined_call_operand.vmem [shape: f32[1,128], index: 8, kind: input, shape index: {}]   ;;  %s3902_s9 = inlined_call_operand.hbm [shape: f32[64,128], index: 9, kind: output, shape index: {}]  }
   0x1   :  { %15 = vsyncpa [#allocation7], 0 }
   0x2   :  { %16 = vsyncpa [#allocation10], 0 }
   0x3   :  { %17 = vsyncpa [#allocation13], 0 }
   0x4   :  { %18 = vsyncpa [#allocation5], 0  ;;  %s3532_s30 = smov [#allocation6]   ;;  %s3368_s13 = scalar_lea.hbm %s3894_s1, 12800 }
   0x5   :  { %s36_s10 = sshll.u32 %s3532_s30, 4  ;;  %p3369_p0 = scmp.ne.s32.totalorder %s3894_s1, %s3368_s13  ;;  %s37_s10 = int_to_ptr.vmem [resolvable:$true] %s36_s10 }
   0x6   :  { %p3372_p1 = scmp.lt.u32.totalorder %s3368_s13, %s3894_s1 }
   0x8   :  { %p3374_p2 = pnand %p3372_p1, %p3369_p0 }
   0xa   :  { %3377 = shalt.err (!%p3374_p2)
}
   0xb   :  { %s3378_s18 = scalar_lea.vmem %s37_s10, 12800  ;;  %p3383_p4 = scmp.lt.s32.totalorder %s37_s10, %s37_s10 }
   0xc   :  { %p3379_p3 = scmp.ne.s32.totalorder %s37_s10, %s3378_s18  ;;  %p3384_p5 = scmp.lt.s32.totalorder %s3378_s18, %s3378_s18 }
   0xe   :  { %p3385_p6 = por %p3384_p5, %p3383_p4 }
  0x10   :  { %p3386_p7 = pnand %p3385_p6, %p3379_p3 }
  0x12   :  { %3389 = shalt.err (!%p3386_p7)
}
  0x13   :  { %s3533_s19 = smov 512   ;;  %s3534_s20 = smov 32  }
  0x14   :  { %42 = dma.hbm_to_vmem [thread:$0]  %s3894_s1, 12800, %s37_s10, [#allocation7], %s3533_s19, %s3533_s19, %s3534_s20  }
  0x15   :  { %s3535_s23 = smov [#allocation9]   ;;  %s3390_s27 = scalar_lea.hbm %s3896_s3, 8192 }
  0x16   :  { %s58_s24 = sshll.u32 %s3535_s23, 4  ;;  %p3391_p8 = scmp.ne.s32.totalorder %s3896_s3, %s3390_s27  ;;  %s59_s24 = int_to_ptr.vmem [resolvable:$true] %s58_s24 }
  0x17   :  { %p3394_p9 = scmp.lt.u32.totalorder %s3390_s27, %s3896_s3 }
  0x19   :  { %p3396_p10 = pnand %p3394_p9, %p3391_p8 }
  0x1b   :  { %3399 = shalt.err (!%p3396_p10)
}
  0x1c   :  { %s3400_s12 = scalar_lea.vmem %s59_s24, 8192  ;;  %p3405_p12 = scmp.lt.s32.totalorder %s59_s24, %s59_s24 }
  0x1d   :  { %p3401_p11 = scmp.ne.s32.totalorder %s59_s24, %s3400_s12  ;;  %p3406_p13 = scmp.lt.s32.totalorder %s3400_s12, %s3400_s12 }
  0x1f   :  { %p3407_p0 = por %p3406_p13, %p3405_p12 }
  0x21   :  { %p3408_p1 = pnand %p3407_p0, %p3401_p11 }
  0x23   :  { %3411 = shalt.err (!%p3408_p1)
}
  0x24   :  { %s3536_s1 = smov 64   ;;  %s3537_s10 = smov 4  }
  0x25   :  { %64 = dma.hbm_to_vmem [thread:$0]  %s3896_s3, 8192, %s59_s24, [#allocation10], %s3536_s1, %s3536_s1, %s3537_s10  }
  0x26   :  { %s3538_s15 = smov [#allocation3]   ;;  %s3412_s19 = scalar_lea.hbm %s3893_s0, 1024 }
  0x27   :  { %s24_s16 = sshll.u32 %s3538_s15, 4  ;;  %p3413_p2 = scmp.ne.s32.totalorder %s3893_s0, %s3412_s19  ;;  %s25_s16 = int_to_ptr.vmem [resolvable:$true] %s24_s16 }
  0x28   :  { %p3416_p3 = scmp.lt.u32.totalorder %s3412_s19, %s3893_s0 }
  0x2a   :  { %p3418_p4 = pnand %p3416_p3, %p3413_p2 }
  0x2c   :  { %3421 = shalt.err (!%p3418_p4)
}
  0x2d   :  { %s3422_s25 = scalar_lea.vmem %s25_s16, 1024  ;;  %p3427_p6 = scmp.lt.s32.totalorder %s25_s16, %s25_s16 }
  0x2e   :  { %p3423_p5 = scmp.ne.s32.totalorder %s25_s16, %s3422_s25  ;;  %p3428_p7 = scmp.lt.s32.totalorder %s3422_s25, %s3422_s25 }
  0x30   :  { %p3429_p8 = por %p3428_p7, %p3427_p6 }
  0x32   :  { %p3430_p9 = pnand %p3429_p8, %p3423_p5 }
  0x34   :  { %3433 = shalt.err (!%p3430_p9)
}
  0x35   :  { %s3539_s3 = smov 128   ;;  %s3540_s24 = smov 8  }
  0x36   :  { %30 = dma.hbm_to_vmem [thread:$0]  %s3893_s0, 1024, %s25_s16, [#allocation4], %s3539_s3, %s3539_s3, %s3540_s24  }
  0x37   :  { %s3541_s28 = smov [#allocation8]   ;;  %s3542_s30 = smov [#allocation11]  }
  0x38   :  { %s49_s29 = sshll.u32 %s3541_s28, 4  ;;  %s72_s11 = sshll.u32 %s3542_s30, 4  ;;  %s50_s29 = int_to_ptr.vmem [resolvable:$true] %s49_s29  ;;  %s73_s11 = int_to_ptr.vmem [resolvable:$true] %s72_s11 }
  0x39   :  { %s3434_s14 = scalar_lea.hbm %s3895_s2, 128 }
  0x3a   :  { %p3435_p10 = scmp.ne.s32.totalorder %s3895_s2, %s3434_s14  ;;  %p3438_p11 = scmp.lt.u32.totalorder %s3434_s14, %s3895_s2 }
  0x3c   :  { %p3440_p12 = pnand %p3438_p11, %p3435_p10 }
  0x3e   :  { %3443 = shalt.err (!%p3440_p12)
}
  0x3f   :  { %s3444_s0 = scalar_lea.vmem %s50_s29, 128  ;;  %p3449_p0 = scmp.lt.s32.totalorder %s50_s29, %s50_s29 }
  0x40   :  { %p3445_p13 = scmp.ne.s32.totalorder %s50_s29, %s3444_s0  ;;  %p3450_p1 = scmp.lt.s32.totalorder %s3444_s0, %s3444_s0 }
  0x42   :  { %p3451_p2 = por %p3450_p1, %p3449_p0 }
  0x44   :  { %p3452_p3 = pnand %p3451_p2, %p3445_p13 }
  0x46   :  { %3455 = shalt.err (!%p3452_p3)
}
  0x47   :  { %52 = dma.hbm_to_vmem [thread:$0]  %s3895_s2, 128, %s50_s29, [#allocation7]  }
  0x48   :  { %s3456_s23 = scalar_lea.hbm %s3898_s5, 1024 }
  0x49   :  { %p3457_p4 = scmp.ne.s32.totalorder %s3898_s5, %s3456_s23  ;;  %p3460_p5 = scmp.lt.u32.totalorder %s3456_s23, %s3898_s5 }
  0x4b   :  { %p3462_p6 = pnand %p3460_p5, %p3457_p4 }
  0x4d   :  { %3465 = shalt.err (!%p3462_p6)
}
  0x4e   :  { %s3466_s30 = scalar_lea.vmem %s73_s11, 1024  ;;  %p3471_p8 = scmp.lt.s32.totalorder %s73_s11, %s73_s11 }
  0x4f   :  { %p3467_p7 = scmp.ne.s32.totalorder %s73_s11, %s3466_s30  ;;  %p3472_p9 = scmp.lt.s32.totalorder %s3466_s30, %s3466_s30 }
  0x51   :  { %p3473_p10 = por %p3472_p9, %p3471_p8 }
  0x53   :  { %p3474_p11 = pnand %p3473_p10, %p3467_p7 }
  0x55   :  { %3477 = shalt.err (!%p3474_p11)
}
  0x56   :  { %78 = dma.hbm_to_vmem [thread:$0]  %s3898_s5, 1024, %s73_s11, [#allocation10], %s3536_s1, %s3536_s1, %s3537_s10  }
  0x57   :  { %s3543_s12 = smov [#allocation12]   ;;  %s3478_s17 = scalar_lea.hbm %s3900_s7, 1024 }
  0x58   :  { %s86_s13 = sshll.u32 %s3543_s12, 4  ;;  %p3479_p12 = scmp.ne.s32.totalorder %s3900_s7, %s3478_s17  ;;  %s87_s13 = int_to_ptr.vmem [resolvable:$true] %s86_s13 }
  0x59   :  { %p3482_p13 = scmp.lt.u32.totalorder %s3478_s17, %s3900_s7 }
  0x5b   :  { %p3484_p0 = pnand %p3482_p13, %p3479_p12 }
  0x5d   :  { %3487 = shalt.err (!%p3484_p0)
}
  0x5e   :  { %s3488_s20 = scalar_lea.vmem %s87_s13, 1024  ;;  %p3493_p2 = scmp.lt.s32.totalorder %s87_s13, %s87_s13 }
  0x5f   :  { %p3489_p1 = scmp.ne.s32.totalorder %s87_s13, %s3488_s20  ;;  %p3494_p3 = scmp.lt.s32.totalorder %s3488_s20, %s3488_s20 }
  0x61   :  { %p3495_p4 = por %p3494_p3, %p3493_p2 }
  0x63   :  { %p3496_p5 = pnand %p3495_p4, %p3489_p1 }
  0x65   :  { %3499 = shalt.err (!%p3496_p5)
}
  0x66   :  { %92 = dma.hbm_to_vmem [thread:$0]  %s3900_s7, 1024, %s87_s13, [#allocation13], %s3536_s1, %s3536_s1, %s3537_s10  }
  0x67   :  { %3522 = dma.done.wait [#allocation4], 1024  }
  0x68   :  { %3523 = vsyncadd [#allocation4], 4294966272 }
  0x69   :  { %3524 = dma.done.wait [#allocation7], 12928  }
  0x6a   :  { %3525 = vsyncadd [#allocation7], 4294954368 }
  0x6b   :  { %3526 = dma.done.wait [#allocation10], 9216  }
  0x6c   :  { %3527 = vsyncadd [#allocation10], 4294958080 }
  0x6d   :  { %3528 = dma.done.wait [#allocation13], 1024  }
  0x6e   :  { %3529 = vsyncadd [#allocation13], 4294966272  ;;  %v254_v0 = vld [vmem:[#allocation6] sm:$0xff]  ;;  %v255_v2 = vld [vmem:[#allocation6 + $0x8] sm:$0xff]  ;;  %vm890_vm0 = vcmask 588800   ;;  %vm903_vm1 = vcmask 1043456  }
  0x6f   :  { %v258_v1 = vld [vmem:[#allocation6 + $0x20] sm:$0xff]  ;;  %v259_v4 = vld [vmem:[#allocation6 + $0x28] sm:$0xff] }
  0x70   :  { %v2777_v3 = vcombine.high %v254_v0, %v258_v1  ;;  %v2776_v5 = vcombine.low %v254_v0, %v258_v1  ;;  %v262_v6 = vld [vmem:[#allocation6 + $0x40] sm:$0xff]  ;;  %v2779_v8 = vcombine.high %v255_v2, %v259_v4  ;;  %v2778_v9 = vcombine.low %v255_v2, %v259_v4  ;;  %v263_v11 = vld [vmem:[#allocation6 + $0x48] sm:$0xff] }
  0x71   :  { %v266_v7 = vld [vmem:[#allocation6 + $0x60] sm:$0xff]  ;;  %v267_v12 = vld [vmem:[#allocation6 + $0x68] sm:$0xff] }
  0x72   :  { %v2785_v10 = vcombine.high %v262_v6, %v266_v7  ;;  %v270_v13 = vld [vmem:[#allocation6 + $0x80] sm:$0xff]  ;;  %928 = vmatprep.subr.bf16.mxu0 %v2777_v3  ;;  %v2787_v14 = vcombine.high %v263_v11, %v267_v12  ;;  %v271_v16 = vld [vmem:[#allocation6 + $0x88] sm:$0xff]  ;;  %1001 = vmatprep.subr.bf16.mxu1 %v2779_v8  ;;  %v2784_v18 = vcombine.low %v262_v6, %v266_v7 }
  0x73   :  { %v274_v15 = vld [vmem:[#allocation6 + $0xa0] sm:$0xff]  ;;  %v275_v17 = vld [vmem:[#allocation6 + $0xa8] sm:$0xff]  ;;  %929 = vmatpush1.bf16.msra.mxu0 %v2776_v5  ;;  %1002 = vmatpush1.bf16.msra.mxu1 %v2778_v9  ;;  %v2786_v19 = vcombine.low %v263_v11, %v267_v12 }
  0x74   :  { %930 = vmatprep.subr.bf16.mxu0 %v2785_v10  ;;  %v2793_v20 = vcombine.high %v270_v13, %v274_v15  ;;  %1003 = vmatprep.subr.bf16.mxu1 %v2787_v14  ;;  %v2795_v21 = vcombine.high %v271_v16, %v275_v17  ;;  %v278_v22 = vld [vmem:[#allocation6 + $0xc0] sm:$0xff]  ;;  %v279_v24 = vld [vmem:[#allocation6 + $0xc8] sm:$0xff]  ;;  %v2792_v26 = vcombine.low %v270_v13, %v274_v15 }
  0x75   :  { %v282_v23 = vld [vmem:[#allocation6 + $0xe0] sm:$0xff]  ;;  %v283_v25 = vld [vmem:[#allocation6 + $0xe8] sm:$0xff]  ;;  %v2794_v27 = vcombine.low %v271_v16, %v275_v17 }
  0x76   :  { %v2801_v28 = vcombine.high %v278_v22, %v282_v23  ;;  %v2803_v29 = vcombine.high %v279_v24, %v283_v25  ;;  %v286_v30 = vld [vmem:[#allocation6 + $0x100] sm:$0xff]  ;;  %v287_v32 = vld [vmem:[#allocation6 + $0x108] sm:$0xff]  ;;  %v2800_v34 = vcombine.low %v278_v22, %v282_v23  ;;  %v2802_v35 = vcombine.low %v279_v24, %v283_v25 }
  0x77   :  { %931 = vmatpush1.bf16.msra.mxu0 %v2784_v18  ;;  %1004 = vmatpush1.bf16.msra.mxu1 %v2786_v19  ;;  %v290_v31 = vld [vmem:[#allocation6 + $0x120] sm:$0xff]  ;;  %v291_v33 = vld [vmem:[#allocation6 + $0x128] sm:$0xff] }
  0x78   :  { %932 = vmatprep.subr.bf16.mxu0 %v2793_v20  ;;  %1005 = vmatprep.subr.bf16.mxu1 %v2795_v21  ;;  %v2809_v36 = vcombine.high %v286_v30, %v290_v31  ;;  %v2811_v37 = vcombine.high %v287_v32, %v291_v33  ;;  %v294_v38 = vld [vmem:[#allocation6 + $0x140] sm:$0xff]  ;;  %v295_v40 = vld [vmem:[#allocation6 + $0x148] sm:$0xff]  ;;  %v2808_v42 = vcombine.low %v286_v30, %v290_v31 }
  0x79   :  { %v298_v39 = vld [vmem:[#allocation6 + $0x160] sm:$0xff]  ;;  %v299_v41 = vld [vmem:[#allocation6 + $0x168] sm:$0xff]  ;;  %v2810_v43 = vcombine.low %v287_v32, %v291_v33 }
  0x7a   :  { %v2817_v44 = vcombine.high %v294_v38, %v298_v39  ;;  %v3679_v45 = vld [vmem:[#allocation3 + $0x4] ss:$8 sps:$4 sm:$0xff]   ;;  %v2819_v46 = vcombine.high %v295_v40, %v299_v41  ;;  %v2816_v51 = vcombine.low %v294_v38, %v298_v39  ;;  %v2818_v52 = vcombine.low %v295_v40, %v299_v41  ;;  %v260_v38 = vld [vmem:[#allocation6 + $0x30] sm:$0xff]  ;;  %v257_v41 = vld [vmem:[#allocation6 + $0x18] sm:$0xff] }
  0x7b   :  { %933 = vmatpush1.bf16.msra.mxu0 %v2792_v26  ;;  %1006 = vmatpush1.bf16.msra.mxu1 %v2794_v27  ;;  %v302_v47 = vld [vmem:[#allocation6 + $0x180] sm:$0xff]  ;;  %v303_v49 = vld [vmem:[#allocation6 + $0x188] sm:$0xff] }
  0x7c   :  { %934 = vmatprep.subr.bf16.mxu0 %v2801_v28  ;;  %1007 = vmatprep.subr.bf16.mxu1 %v2803_v29  ;;  %v306_v48 = vld [vmem:[#allocation6 + $0x1a0] sm:$0xff]  ;;  %v307_v50 = vld [vmem:[#allocation6 + $0x1a8] sm:$0xff] }
  0x7d   :  { %2881 = vmatprep.mubr.msk.bf16.mxu0 %vm890_vm0, %v3679_v45  ;;  %2886 = vmatprep.mubr.msk.bf16.mxu1 %vm890_vm0, %v3679_v45  ;;  %v2825_v53 = vcombine.high %v302_v47, %v306_v48  ;;  %v2827_v54 = vcombine.high %v303_v49, %v307_v50  ;;  %v310_v55 = vld [vmem:[#allocation6 + $0x1c0] sm:$0xff]  ;;  %v311_v57 = vld [vmem:[#allocation6 + $0x1c8] sm:$0xff]  ;;  %v2824_v59 = vcombine.low %v302_v47, %v306_v48  ;;  %v268_v48 = vld [vmem:[#allocation6 + $0x70] sm:$0xff] }
  0x7e   :  { %v314_v56 = vld [vmem:[#allocation6 + $0x1e0] sm:$0xff]  ;;  %v315_v58 = vld [vmem:[#allocation6 + $0x1e8] sm:$0xff]  ;;  %v2826_v60 = vcombine.low %v303_v49, %v307_v50 }
  0x7f   :  { %935 = vmatpush1.bf16.msra.mxu0 %v2800_v34  ;;  %1008 = vmatpush1.bf16.msra.mxu1 %v2802_v35  ;;  %v2833_v61 = vcombine.high %v310_v55, %v314_v56  ;;  %v2835_v62 = vcombine.high %v311_v57, %v315_v58  ;;  %v318_v63 = vld [vmem:[#allocation6 + $0x200] sm:$0xff]  ;;  %v319_v1 = vld [vmem:[#allocation6 + $0x208] sm:$0xff]  ;;  %v2832_v3 = vcombine.low %v310_v55, %v314_v56  ;;  %v256_v34 = vld [vmem:[#allocation6 + $0x10] sm:$0xff] }
  0x80   :  { %936 = vmatprep.subr.bf16.mxu0 %v2809_v36  ;;  %1009 = vmatprep.subr.bf16.mxu1 %v2811_v37  ;;  %v322_v0 = vld [vmem:[#allocation6 + $0x220] sm:$0xff]  ;;  %v323_v2 = vld [vmem:[#allocation6 + $0x228] sm:$0xff]  ;;  %v2834_v4 = vcombine.low %v311_v57, %v315_v58  ;;  %v2781_v47 = vcombine.high %v256_v34, %v260_v38  ;;  %v276_v55 = vld [vmem:[#allocation6 + $0xb0] sm:$0xff] }
  0x81   :  { %v2841_v5 = vcombine.high %v318_v63, %v322_v0  ;;  %v2843_v6 = vcombine.high %v319_v1, %v323_v2  ;;  %v326_v7 = vld [vmem:[#allocation6 + $0x240] sm:$0xff]  ;;  %v327_v9 = vld [vmem:[#allocation6 + $0x248] sm:$0xff]  ;;  %v2840_v11 = vcombine.low %v318_v63, %v322_v0  ;;  %v2842_v12 = vcombine.low %v319_v1, %v323_v2  ;;  %v273_v58 = vld [vmem:[#allocation6 + $0x98] sm:$0xff] }
  0x82   :  { %v330_v8 = vld [vmem:[#allocation6 + $0x260] sm:$0xff]  ;;  %v331_v10 = vld [vmem:[#allocation6 + $0x268] sm:$0xff]  ;;  %v280_v63 = vld [vmem:[#allocation6 + $0xd0] sm:$0xff] }
  0x83   :  { %937 = vmatpush1.bf16.msra.mxu0 %v2808_v42  ;;  %1010 = vmatpush1.bf16.msra.mxu1 %v2810_v43  ;;  %v2849_v13 = vcombine.high %v326_v7, %v330_v8  ;;  %v2851_v14 = vcombine.high %v327_v9, %v331_v10  ;;  %v334_v15 = vld [vmem:[#allocation6 + $0x280] sm:$0xff]  ;;  %v335_v17 = vld [vmem:[#allocation6 + $0x288] sm:$0xff]  ;;  %v2848_v19 = vcombine.low %v326_v7, %v330_v8  ;;  %v261_v42 = vld [vmem:[#allocation6 + $0x38] sm:$0xff] }
  0x84   :  { %938 = vmatprep.subr.bf16.mxu0 %v2817_v44  ;;  %1011 = vmatprep.subr.bf16.mxu1 %v2819_v46  ;;  %v338_v16 = vld [vmem:[#allocation6 + $0x2a0] sm:$0xff]  ;;  %v339_v18 = vld [vmem:[#allocation6 + $0x2a8] sm:$0xff]  ;;  %v2850_v20 = vcombine.low %v327_v9, %v331_v10  ;;  %v264_v43 = vld [vmem:[#allocation6 + $0x50] sm:$0xff]  ;;  %v2783_v50 = vcombine.high %v257_v41, %v261_v42  ;;  %v2782_v56 = vcombine.low %v257_v41, %v261_v42 }
  0x85   :  { %v2857_v21 = vcombine.high %v334_v15, %v338_v16  ;;  %v342_v22 = vld [vmem:[#allocation6 + $0x2c0] sm:$0xff]  ;;  %v2859_v23 = vcombine.high %v335_v17, %v339_v18  ;;  %v343_v25 = vld [vmem:[#allocation6 + $0x2c8] sm:$0xff]  ;;  %v2856_v27 = vcombine.low %v334_v15, %v338_v16  ;;  %v2858_v28 = vcombine.low %v335_v17, %v339_v18  ;;  %v284_v0 = vld [vmem:[#allocation6 + $0xf0] sm:$0xff] }
  0x86   :  { %v346_v24 = vld [vmem:[#allocation6 + $0x2e0] sm:$0xff]  ;;  %v347_v26 = vld [vmem:[#allocation6 + $0x2e8] sm:$0xff]  ;;  %v2789_v57 = vcombine.high %v264_v43, %v268_v48  ;;  %v288_v8 = vld [vmem:[#allocation6 + $0x110] sm:$0xff]  ;;  %v2804_v16 = vcombine.low %v280_v63, %v284_v0 }
  0x87   :  { %939 = vmatpush1.bf16.msra.mxu0 %v2816_v51  ;;  %1012 = vmatpush1.bf16.msra.mxu1 %v2818_v52  ;;  %v2865_v29 = vcombine.high %v342_v22, %v346_v24  ;;  %v350_v30 = vld [vmem:[#allocation6 + $0x300] sm:$0xff]  ;;  %v2867_v31 = vcombine.high %v343_v25, %v347_v26  ;;  %v351_v32 = vld [vmem:[#allocation6 + $0x308] sm:$0xff]  ;;  %v2864_v33 = vcombine.low %v342_v22, %v346_v24  ;;  %v265_v51 = vld [vmem:[#allocation6 + $0x58] sm:$0xff] }
  0x88   :  { %940 = vmatprep.subr.bf16.mxu0 %v2825_v53  ;;  %1013 = vmatprep.subr.bf16.mxu1 %v2827_v54  ;;  %v2866_v35 = vcombine.low %v343_v25, %v347_v26  ;;  %v2873_v36 = vcombine.high %v350_v30, %v350_v30  ;;  %v2872_v37 = vcombine.low %v350_v30, %v350_v30  ;;  %v3687_v46 = vld [vmem:[#allocation3] ss:$8 sps:$4 sm:$0xff]   ;;  %v269_v52 = vld [vmem:[#allocation6 + $0x78] sm:$0xff]  ;;  %v272_v54 = vld [vmem:[#allocation6 + $0x90] sm:$0xff] }
  0x89   :  { %v2875_v39 = vcombine.high %v351_v32, %v351_v32  ;;  %v2874_v40 = vcombine.low %v351_v32, %v351_v32  ;;  %v2780_v53 = vcombine.low %v256_v34, %v260_v38  ;;  %v2790_v1 = vcombine.low %v265_v51, %v269_v52  ;;  %v292_v9 = vld [vmem:[#allocation6 + $0x130] sm:$0xff]  ;;  %v3701_v10 = vld [vmem:[#allocation3 + $0x24] ss:$8 sps:$4 sm:$0xff]   ;;  %v301_v22 = vld [vmem:[#allocation6 + $0x178] sm:$0xff] }
  0x8a   :  { %v905_v44 = vsel %vm903_vm1, %v2872_v37, 0  ;;  %v2797_v2 = vcombine.high %v272_v54, %v276_v55  ;;  %v2796_v7 = vcombine.low %v272_v54, %v276_v55  ;;  %v296_v17 = vld [vmem:[#allocation6 + $0x150] sm:$0xff]  ;;  %v2812_v25 = vcombine.low %v288_v8, %v292_v9  ;;  %v309_v32 = vld [vmem:[#allocation6 + $0x1b8] sm:$0xff] }
  0x8b   :  { %941 = vmatpush1.bf16.msra.mxu0 %v2824_v59  ;;  %1014 = vmatpush1.bf16.msra.mxu1 %v2826_v60  ;;  %v911_v49 = vsel %vm903_vm1, %v2874_v40, 0  ;;  %v2791_v59 = vcombine.high %v265_v51, %v269_v52  ;;  %v3691_v60 = vld [vmem:[#allocation3 + $0x14] ss:$8 sps:$4 sm:$0xff]   ;;  %v3715_v41 = vld [vmem:[#allocation3 + $0x30] ss:$8 sps:$4 sm:$0xff]  }
  0x8c   :  { %942 = vmatprep.subr.bf16.mxu0 %v2833_v61  ;;  %1015 = vmatprep.subr.bf16.mxu1 %v2835_v62  ;;  %v277_v61 = vld [vmem:[#allocation6 + $0xb8] sm:$0xff]  ;;  %v2788_v62 = vcombine.low %v264_v43, %v268_v48  ;;  %v300_v18 = vld [vmem:[#allocation6 + $0x170] sm:$0xff] }
  0x8d   :  { %v304_v26 = vld [vmem:[#allocation6 + $0x190] sm:$0xff]  ;;  %v2821_v30 = vcombine.high %v296_v17, %v300_v18  ;;  %v2820_v34 = vcombine.low %v296_v17, %v300_v18  ;;  %v317_v40 = vld [vmem:[#allocation6 + $0x1f8] sm:$0xff] }
  0x8e   :  { %v325_v51 = vld [vmem:[#allocation6 + $0x238] sm:$0xff]  ;;  %v328_v54 = vld [vmem:[#allocation6 + $0x250] sm:$0xff] }
  0x8f   :  { %943 = vmatpush1.bf16.msra.mxu0 %v2832_v3  ;;  %1016 = vmatpush1.bf16.msra.mxu1 %v2834_v4  ;;  %v281_v3 = vld [vmem:[#allocation6 + $0xd8] sm:$0xff]  ;;  %v2799_v4 = vcombine.high %v273_v58, %v277_v61  ;;  %v332_v55 = vld [vmem:[#allocation6 + $0x270] sm:$0xff] }
  0x90   :  { %944 = vmatprep.subr.bf16.mxu0 %v2841_v5  ;;  %1017 = vmatprep.subr.bf16.mxu1 %v2843_v6  ;;  %v285_v5 = vld [vmem:[#allocation6 + $0xf8] sm:$0xff] }
  0x91   :  { %v3697_v6 = vld [vmem:[#allocation3 + $0x10] ss:$8 sps:$4 sm:$0xff]   ;;  %v2807_v15 = vcombine.high %v281_v3, %v285_v5 }
  0x93   :  { %945 = vmatpush1.bf16.msra.mxu0 %v2840_v11  ;;  %1018 = vmatpush1.bf16.msra.mxu1 %v2842_v12  ;;  %v2798_v11 = vcombine.low %v273_v58, %v277_v61  ;;  %v2805_v12 = vcombine.high %v280_v63, %v284_v0  ;;  %v329_v58 = vld [vmem:[#allocation6 + $0x258] sm:$0xff]  ;;  %v336_v63 = vld [vmem:[#allocation6 + $0x290] sm:$0xff] }
  0x94   :  { %946 = vmatprep.subr.bf16.mxu0 %v2849_v13  ;;  %1019 = vmatprep.subr.bf16.mxu1 %v2851_v14  ;;  %v289_v13 = vld [vmem:[#allocation6 + $0x118] sm:$0xff]  ;;  %v340_v0 = vld [vmem:[#allocation6 + $0x2b0] sm:$0xff] }
  0x95   :  { %v293_v14 = vld [vmem:[#allocation6 + $0x138] sm:$0xff] }
  0x96   :  { %v2815_v24 = vcombine.high %v289_v13, %v293_v14 }
  0x97   :  { %947 = vmatpush1.bf16.msra.mxu0 %v2848_v19  ;;  %1020 = vmatpush1.bf16.msra.mxu1 %v2850_v20  ;;  %v2806_v19 = vcombine.low %v281_v3, %v285_v5  ;;  %v2813_v20 = vcombine.high %v288_v8, %v292_v9  ;;  %v337_v3 = vld [vmem:[#allocation6 + $0x298] sm:$0xff]  ;;  %v344_v8 = vld [vmem:[#allocation6 + $0x2d0] sm:$0xff] }
  0x98   :  { %948 = vmatprep.subr.bf16.mxu0 %v2857_v21  ;;  %1021 = vmatprep.subr.bf16.mxu1 %v2859_v23  ;;  %v297_v21 = vld [vmem:[#allocation6 + $0x158] sm:$0xff]  ;;  %v3705_v23 = vld [vmem:[#allocation3 + $0x20] ss:$8 sps:$4 sm:$0xff]   ;;  %v348_v9 = vld [vmem:[#allocation6 + $0x2f0] sm:$0xff] }
  0x99   :  { %v2822_v37 = vcombine.low %v297_v21, %v301_v22  ;;  %v2869_v18 = vcombine.high %v344_v8, %v348_v9 }
  0x9b   :  { %949 = vmatpush1.bf16.msra.mxu0 %v2856_v27  ;;  %1022 = vmatpush1.bf16.msra.mxu1 %v2858_v28  ;;  %v308_v27 = vld [vmem:[#allocation6 + $0x1b0] sm:$0xff] }
  0x9c   :  { %950 = vmatprep.subr.bf16.mxu0 %v2865_v29  ;;  %1023 = vmatprep.subr.bf16.mxu1 %v2867_v31  ;;  %v3711_v28 = vld [vmem:[#allocation3 + $0x34] ss:$8 sps:$4 sm:$0xff]   ;;  %v2814_v29 = vcombine.low %v289_v13, %v293_v14  ;;  %v2829_v38 = vcombine.high %v304_v26, %v308_v27  ;;  %v2828_v43 = vcombine.low %v304_v26, %v308_v27 }
  0x9d   :  { %v305_v31 = vld [vmem:[#allocation6 + $0x198] sm:$0xff] }
  0x9e   :  { %v2831_v42 = vcombine.high %v305_v31, %v309_v32  ;;  %v2830_v48 = vcombine.low %v305_v31, %v309_v32  ;;  %v349_v13 = vld [vmem:[#allocation6 + $0x2f8] sm:$0xff]  ;;  %v3257_v32 = vld [vmem:[#allocation9 + $0xc0] sm:$0xff]  }
  0x9f   :  { %951 = vmatpush1.bf16.msra.mxu0 %v2864_v33  ;;  %1024 = vmatpush1.bf16.msra.mxu1 %v2866_v35  ;;  %v2823_v33 = vcombine.high %v297_v21, %v301_v22  ;;  %v312_v35 = vld [vmem:[#allocation6 + $0x1d0] sm:$0xff]  ;;  %v2868_v21 = vcombine.low %v344_v8, %v348_v9 }
  0xa0   :  { %2880 = vmatprep.subr.msk.bf16.mxu0 %vm903_vm1, %v2873_v36  ;;  %2885 = vmatprep.subr.msk.bf16.mxu1 %vm903_vm1, %v2875_v39  ;;  %v316_v36 = vld [vmem:[#allocation6 + $0x1f0] sm:$0xff]  ;;  %v313_v39 = vld [vmem:[#allocation6 + $0x1d8] sm:$0xff] }
  0xa1   :  { %v2839_v52 = vcombine.high %v313_v39, %v317_v40 }
  0xa3   :  { %953 = vmatpush1.bf16.msra.mxu0 %v905_v44  ;;  %1026 = vmatpush1.bf16.msra.mxu1 %v911_v49  ;;  %v320_v44 = vld [vmem:[#allocation6 + $0x210] sm:$0xff]  ;;  %v2837_v49 = vcombine.high %v312_v35, %v316_v36 }
  0xa4   :  { %1074 = vmatprep.subr.bf16.mxu0 %v2781_v47  ;;  %1147 = vmatprep.subr.bf16.mxu1 %v2783_v50  ;;  %v324_v47 = vld [vmem:[#allocation6 + $0x230] sm:$0xff]  ;;  %v321_v50 = vld [vmem:[#allocation6 + $0x218] sm:$0xff] }
  0xa5   :  { %v2847_v61 = vcombine.high %v321_v50, %v325_v51 }
  0xa6   :  { %961 = vmatmul.mubr.bf16.vlgmr.msra.gmra.mrb[0].mxu0 %v3687_v46  ;;  %1034 = vmatmul.mubr.bf16.vlgmr.msra.gmra.mrb[0].mxu1 %v3687_v46 }
  0xa7   :  { %1075 = vmatpush1.bf16.msra.mxu0 %v2780_v53  ;;  %1148 = vmatpush1.bf16.msra.mxu1 %v2782_v56  ;;  %v2836_v53 = vcombine.low %v312_v35, %v316_v36  ;;  %v2838_v56 = vcombine.low %v313_v39, %v317_v40  ;;  %v3260_v35 = vld [vmem:[#allocation9 + $0x48] sm:$0xff]   ;;  %v3264_v39 = vld [vmem:[#allocation9 + $0x50] sm:$0xff]  }
  0xa8   :  { %1076 = vmatprep.subr.bf16.mxu0 %v2789_v57  ;;  %1149 = vmatprep.subr.bf16.mxu1 %v2791_v59  ;;  %v2845_v57 = vcombine.high %v320_v44, %v324_v47  ;;  %v333_v59 = vld [vmem:[#allocation6 + $0x278] sm:$0xff]  ;;  %v3261_v36 = vld [vmem:[#allocation9 + $0xc8] sm:$0xff]  }
  0xa9   :  { %2882 = vmatprep.mubr.msk.bf16.mxu0 %vm890_vm0, %v3691_v60  ;;  %2887 = vmatprep.mubr.msk.bf16.mxu1 %vm890_vm0, %v3691_v60  ;;  %v2855_v5 = vcombine.high %v329_v58, %v333_v59  ;;  %v3265_v40 = vld [vmem:[#allocation9 + $0xd0] sm:$0xff]  }
  0xab   :  { %1077 = vmatpush1.bf16.msra.mxu0 %v2788_v62  ;;  %1150 = vmatpush1.bf16.msra.mxu1 %v2790_v1  ;;  %v2844_v62 = vcombine.low %v320_v44, %v324_v47  ;;  %v2846_v1 = vcombine.low %v321_v50, %v325_v51  ;;  %v3269_v44 = vld [vmem:[#allocation9 + $0xd8] sm:$0xff]   ;;  %v3274_v50 = vld [vmem:[#allocation9 + $0x20] sm:$0xff]  }
  0xac   :  { %1078 = vmatprep.subr.bf16.mxu0 %v2797_v2  ;;  %1151 = vmatprep.subr.bf16.mxu1 %v2799_v4  ;;  %v2853_v2 = vcombine.high %v328_v54, %v332_v55  ;;  %v341_v4 = vld [vmem:[#allocation6 + $0x2b8] sm:$0xff]  ;;  %v3271_v47 = vld [vmem:[#allocation9 + $0x98] sm:$0xff]   ;;  %v3275_v51 = vld [vmem:[#allocation9 + $0xa0] sm:$0xff]  }
  0xad   :  { %v2863_v14 = vcombine.high %v337_v3, %v341_v4  ;;  %v2862_v17 = vcombine.low %v337_v3, %v341_v4 }
  0xae   :  { %971 = vmatmul.mubr.bf16.gmra.mrb[4].mxu0 %v3697_v6  ;;  %1044 = vmatmul.mubr.bf16.gmra.mrb[4].mxu1 %v3697_v6 }
  0xaf   :  { %1079 = vmatpush1.bf16.msra.mxu0 %v2796_v7  ;;  %1152 = vmatpush1.bf16.msra.mxu1 %v2798_v11  ;;  %v2852_v7 = vcombine.low %v328_v54, %v332_v55  ;;  %v2854_v11 = vcombine.low %v329_v58, %v333_v59  ;;  %v3280_v54 = vld [vmem:[#allocation9 + $0x70] sm:$0xff]   ;;  %v3286_v58 = vld [vmem:[#allocation9 + $0x38] sm:$0xff]  }
  0xb0   :  { %1080 = vmatprep.subr.bf16.mxu0 %v2805_v12  ;;  %1153 = vmatprep.subr.bf16.mxu1 %v2807_v15  ;;  %v345_v12 = vld [vmem:[#allocation6 + $0x2d8] sm:$0xff]  ;;  %v2860_v15 = vcombine.low %v336_v63, %v340_v0  ;;  %v3287_v59 = vld [vmem:[#allocation9 + $0xb8] sm:$0xff]  }
  0xb1   :  { %2883 = vmatprep.mubr.msk.bf16.mxu0 %vm890_vm0, %v3701_v10  ;;  %2888 = vmatprep.mubr.msk.bf16.mxu1 %vm890_vm0, %v3701_v10  ;;  %v2870_v22 = vcombine.low %v345_v12, %v349_v13  ;;  %v3282_v55 = vld [vmem:[#allocation9 + $0x30] sm:$0xff]  }
  0xb3   :  { %1081 = vmatpush1.bf16.msra.mxu0 %v2804_v16  ;;  %1154 = vmatpush1.bf16.msra.mxu1 %v2806_v19  ;;  %v352_v16 = vld [vmem:[#allocation6 + $0x310] sm:$0xff]  ;;  %v353_v19 = vld [vmem:[#allocation6 + $0x318] sm:$0xff] }
  0xb4   :  { %1082 = vmatprep.subr.bf16.mxu0 %v2813_v20  ;;  %1155 = vmatprep.subr.bf16.mxu1 %v2815_v24  ;;  %v2871_v20 = vcombine.high %v345_v12, %v349_v13  ;;  %v2877_v24 = vcombine.high %v352_v16, %v352_v16  ;;  %v2879_v26 = vcombine.high %v353_v19, %v353_v19 }
  0xb5   :  { %v2878_v27 = vcombine.low %v353_v19, %v353_v19 }
  0xb6   :  { %981 = vmatmul.mubr.bf16.gmra.mrb[8].mxu0 %v3705_v23  ;;  %1054 = vmatmul.mubr.bf16.gmra.mrb[8].mxu1 %v3705_v23 }
  0xb7   :  { %1083 = vmatpush1.bf16.msra.mxu0 %v2812_v25  ;;  %1156 = vmatpush1.bf16.msra.mxu1 %v2814_v29  ;;  %v2876_v25 = vcombine.low %v352_v16, %v352_v16  ;;  %v923_v31 = vsel %vm903_vm1, %v2878_v27, 0 }
  0xb8   :  { %1084 = vmatprep.subr.bf16.mxu0 %v2821_v30  ;;  %1157 = vmatprep.subr.bf16.mxu1 %v2823_v33  ;;  %v3256_v30 = vld [vmem:[#allocation9 + $0x40] sm:$0xff]  }
  0xb9   :  { %2884 = vmatprep.mubr.msk.bf16.mxu0 %vm890_vm0, %v3711_v28  ;;  %2889 = vmatprep.mubr.msk.bf16.mxu1 %vm890_vm0, %v3711_v28  ;;  %v917_v29 = vsel %vm903_vm1, %v2876_v25, 0  ;;  %v3258_v33 = vld [vmem:[#allocation9] sm:$0xff]  }
  0xbb   :  { %1085 = vmatpush1.bf16.msra.mxu0 %v2820_v34  ;;  %1158 = vmatpush1.bf16.msra.mxu1 %v2822_v37  ;;  %v3259_v34 = vld [vmem:[#allocation9 + $0x80] sm:$0xff]   ;;  %v3262_v37 = vld [vmem:[#allocation9 + $0x8] sm:$0xff]  }
  0xbc   :  { %1086 = vmatprep.subr.bf16.mxu0 %v2829_v38  ;;  %1159 = vmatprep.subr.bf16.mxu1 %v2831_v42  ;;  %v3263_v38 = vld [vmem:[#allocation9 + $0x88] sm:$0xff]   ;;  %v3266_v42 = vld [vmem:[#allocation9 + $0x10] sm:$0xff]  }
  0xbe   :  { %991 = vmatmul.mubr.bf16.gmra.mrb[12].mxu0 %v3715_v41  ;;  %1064 = vmatmul.mubr.bf16.gmra.mrb[12].mxu1 %v3715_v41 }
  0xbf   :  { %1087 = vmatpush1.bf16.msra.mxu0 %v2828_v43  ;;  %1160 = vmatpush1.bf16.msra.mxu1 %v2830_v48  ;;  %v3267_v43 = vld [vmem:[#allocation9 + $0x90] sm:$0xff]   ;;  %v3272_v48 = vld [vmem:[#allocation9 + $0x60] sm:$0xff]  }
  0xc0   :  { %1088 = vmatprep.subr.bf16.mxu0 %v2837_v49  ;;  %1161 = vmatprep.subr.bf16.mxu1 %v2839_v52  ;;  %v3273_v49 = vld [vmem:[#allocation9 + $0xe0] sm:$0xff]   ;;  %v3277_v52 = vld [vmem:[#allocation9 + $0xe8] sm:$0xff]  }
  0xc1   :  { %2891 = vmatprep.mubr.msk.bf16.mxu0 %vm890_vm0, %v3679_v45  ;;  %2896 = vmatprep.mubr.msk.bf16.mxu1 %vm890_vm0, %v3679_v45  ;;  %v2861_v45 = vcombine.high %v336_v63, %v340_v0 }
  0xc3   :  { %1089 = vmatpush1.bf16.msra.mxu0 %v2836_v53  ;;  %1162 = vmatpush1.bf16.msra.mxu1 %v2838_v56  ;;  %v3279_v53 = vld [vmem:[#allocation9 + $0xa8] sm:$0xff]   ;;  %v3283_v56 = vld [vmem:[#allocation9 + $0xb0] sm:$0xff]  }
  0xc4   :  { %1090 = vmatprep.subr.bf16.mxu0 %v2845_v57  ;;  %1163 = vmatprep.subr.bf16.mxu1 %v2847_v61  ;;  %v3285_v57 = vld [vmem:[#allocation9 + $0xf8] sm:$0xff]   ;;  %v3290_v61 = vld [vmem:[#allocation9 + $0x1c0] sm:$0xff]  }
  0xc7   :  { %1091 = vmatpush1.bf16.msra.mxu0 %v2844_v62  ;;  %1164 = vmatpush1.bf16.msra.mxu1 %v2846_v1  ;;  %v1417_v62 = vlaneseq  ;;  %v3754_v1 = vld [vmem:[#allocation8] sm:$0xff] }
  0xc8   :  { %1092 = vmatprep.subr.bf16.mxu0 %v2853_v2  ;;  %1165 = vmatprep.subr.bf16.mxu1 %v2855_v5 }
  0xc9   :  { %v3751_v63 = vshrl.u32 %v1417_v62, 7 }
  0xcb   :  { %1093 = vmatpush1.bf16.msra.mxu0 %v2852_v7  ;;  %1166 = vmatpush1.bf16.msra.mxu1 %v2854_v11  ;;  %v1419_v0 = vsub.s32 0, %v3751_v63  ;;  %v1427_v2 = vsub.s32 2, %v3751_v63  ;;  %v1423_v3 = vsub.s32 1, %v3751_v63  ;;  %v1431_v4 = vsub.s32 3, %v3751_v63 }
  0xcc   :  { %1094 = vmatprep.subr.bf16.mxu0 %v2861_v45  ;;  %1167 = vmatprep.subr.bf16.mxu1 %v2863_v14 }
  0xcd   :  { %v3760_v5 = vrot.slane %v3754_v1, %v1419_v0  ;;  %v3763_v7 = vrot.slane %v3754_v1, %v1427_v2  ;;  %v3766_v8 = vrot.slane %v3754_v1, %v1423_v3  ;;  %v3769_v9 = vrot.slane %v3754_v1, %v1431_v4  ;;  %v3295_v0 = vld [vmem:[#allocation9 + $0x188] sm:$0xff]   ;;  %v3296_v2 = vld [vmem:[#allocation9 + $0x150] sm:$0xff]  }
  0xcf   :  { %1095 = vmatpush1.bf16.msra.mxu0 %v2860_v15  ;;  %1168 = vmatpush1.bf16.msra.mxu1 %v2862_v17 }
  0xd0   :  { %1096 = vmatprep.subr.bf16.mxu0 %v2869_v18  ;;  %1169 = vmatprep.subr.bf16.mxu1 %v2871_v20 }
  0xd3   :  { %1097 = vmatpush1.bf16.msra.mxu0 %v2868_v21  ;;  %1170 = vmatpush1.bf16.msra.mxu1 %v2870_v22 }
  0xd4   :  { %2890 = vmatprep.subr.msk.bf16.mxu0 %vm903_vm1, %v2877_v24  ;;  %2895 = vmatprep.subr.msk.bf16.mxu1 %vm903_vm1, %v2879_v26 }
  0xd7   :  { %1099 = vmatpush1.bf16.msra.mxu0 %v917_v29  ;;  %1172 = vmatpush1.bf16.msra.mxu1 %v923_v31 }
  0xd8   :  { %2991 = vmatprep.subr.bf16.mxu0 %v3256_v30  ;;  %3031 = vmatprep.subr.bf16.mxu1 %v3257_v32 }
  0xda   :  { %1107 = vmatmul.mubr.bf16.vlgmr.msra.gmra.mrb[16].mxu0 %v3687_v46  ;;  %1180 = vmatmul.mubr.bf16.vlgmr.msra.gmra.mrb[16].mxu1 %v3687_v46  ;;  %v3268_v46 = vld [vmem:[#allocation9 + $0x58] sm:$0xff]  }
  0xdb   :  { %2892 = vmatprep.mubr.msk.bf16.mxu0 %vm890_vm0, %v3691_v60  ;;  %2897 = vmatprep.mubr.msk.bf16.mxu1 %vm890_vm0, %v3691_v60  ;;  %v3270_v60 = vld [vmem:[#allocation9 + $0x18] sm:$0xff]  }
  0xdc   :  { %2992 = vmatpush3.bf16.msra.mxu0 %v3258_v33  ;;  %3032 = vmatpush3.bf16.msra.mxu1 %v3259_v34 }
  0xdd   :  { %2993 = vmatprep.subr.bf16.mxu0 %v3260_v35  ;;  %3033 = vmatprep.subr.bf16.mxu1 %v3261_v36 }
  0xe0   :  { %2994 = vmatpush3.bf16.msra.mxu0 %v3262_v37  ;;  %3034 = vmatpush3.bf16.msra.mxu1 %v3263_v38 }
  0xe1   :  { %2995 = vmatprep.subr.bf16.mxu0 %v3264_v39  ;;  %3035 = vmatprep.subr.bf16.mxu1 %v3265_v40  ;;  %v3289_v40 = vld [vmem:[#allocation9 + $0x100] sm:$0xff]  }
  0xe2   :  { %1117 = vmatmul.mubr.bf16.gmra.mrb[20].mxu0 %v3697_v6  ;;  %1190 = vmatmul.mubr.bf16.gmra.mrb[20].mxu1 %v3697_v6  ;;  %v3276_v6 = vld [vmem:[#allocation9 + $0x68] sm:$0xff]  }
  0xe3   :  { %2893 = vmatprep.mubr.msk.bf16.mxu0 %vm890_vm0, %v3701_v10  ;;  %2898 = vmatprep.mubr.msk.bf16.mxu1 %vm890_vm0, %v3701_v10  ;;  %v3278_v10 = vld [vmem:[#allocation9 + $0x28] sm:$0xff]  }
  0xe4   :  { %2996 = vmatpush3.bf16.msra.mxu0 %v3266_v42  ;;  %3036 = vmatpush3.bf16.msra.mxu1 %v3267_v43 }
  0xe5   :  { %2997 = vmatprep.subr.bf16.mxu0 %v3268_v46  ;;  %3037 = vmatprep.subr.bf16.mxu1 %v3269_v44 }
  0xe8   :  { %2998 = vmatpush3.bf16.msra.mxu0 %v3270_v60  ;;  %3038 = vmatpush3.bf16.msra.mxu1 %v3271_v47  ;;  %v3291_v60 = vld [vmem:[#allocation9 + $0x180] sm:$0xff]   ;;  %v3292_v47 = vld [vmem:[#allocation9 + $0x148] sm:$0xff]  }
  0xe9   :  { %2999 = vmatprep.subr.bf16.mxu0 %v3272_v48  ;;  %3039 = vmatprep.subr.bf16.mxu1 %v3273_v49 }
  0xea   :  { %1127 = vmatmul.mubr.bf16.gmra.mrb[24].mxu0 %v3705_v23  ;;  %1200 = vmatmul.mubr.bf16.gmra.mrb[24].mxu1 %v3705_v23  ;;  %v3281_v23 = vld [vmem:[#allocation9 + $0xf0] sm:$0xff]  }
  0xeb   :  { %2894 = vmatprep.mubr.msk.bf16.mxu0 %vm890_vm0, %v3711_v28  ;;  %2899 = vmatprep.mubr.msk.bf16.mxu1 %vm890_vm0, %v3711_v28  ;;  %v3284_v28 = vld [vmem:[#allocation9 + $0x78] sm:$0xff]  }
  0xec   :  { %3000 = vmatpush3.bf16.msra.mxu0 %v3274_v50  ;;  %3040 = vmatpush3.bf16.msra.mxu1 %v3275_v51 }
  0xed   :  { %3001 = vmatprep.subr.bf16.mxu0 %v3276_v6  ;;  %3041 = vmatprep.subr.bf16.mxu1 %v3277_v52  ;;  %v3294_v6 = vld [vmem:[#allocation9 + $0x1c8] sm:$0xff]  }
  0xf0   :  { %3002 = vmatpush3.bf16.msra.mxu0 %v3278_v10  ;;  %3042 = vmatpush3.bf16.msra.mxu1 %v3279_v53 }
  0xf1   :  { %3003 = vmatprep.subr.bf16.mxu0 %v3280_v54  ;;  %3043 = vmatprep.subr.bf16.mxu1 %v3281_v23 }
  0xf2   :  { %1137 = vmatmul.mubr.bf16.gmra.mrb[28].mxu0 %v3715_v41  ;;  %1210 = vmatmul.mubr.bf16.gmra.mrb[28].mxu1 %v3715_v41  ;;  %v3288_v41 = vld [vmem:[#allocation9 + $0x140] sm:$0xff]  }
  0xf4   :  { %3004 = vmatpush3.bf16.msra.mxu0 %v3282_v55  ;;  %3044 = vmatpush3.bf16.msra.mxu1 %v3283_v56 }
  0xf5   :  { %3005 = vmatprep.subr.bf16.mxu0 %v3284_v28  ;;  %3045 = vmatprep.subr.bf16.mxu1 %v3285_v57 }
  0xf8   :  { %3006 = vmatpush3.bf16.msra.mxu0 %v3286_v58  ;;  %3046 = vmatpush3.bf16.msra.mxu1 %v3287_v59  ;;  %v3293_v59 = vld [vmem:[#allocation9 + $0x108] sm:$0xff]  }
  0xf9   :  { %3071 = vmatprep.subr.bf16.mxu0 %v3288_v41  ;;  %3111 = vmatprep.subr.bf16.mxu1 %v3290_v61 }
 0x179   :  { %v962_v11 = vpop.f32.mrb[0].mxu0  ;;  %v1035_v12 = vpop.f32.mrb[0].mxu1 }
 0x17a   :  { %v1457_v45 = vadd.f32 %v3760_v5, %v962_v11  ;;  %v964_v13 = vpop.f32.mrb[1].mxu0  ;;  %v1459_v14 = vadd.f32 %v3763_v7, %v1035_v12  ;;  %v1037_v16 = vpop.f32.mrb[1].mxu1  ;;  %v3298_v11 = vld [vmem:[#allocation9 + $0x1d0] sm:$0xff]  }
 0x17b   :  { %v1458_v15 = vadd.f32 %v3766_v8, %v964_v13  ;;  %v966_v17 = vpop.f32.mrb[2].mxu0  ;;  %v1460_v19 = vadd.f32 %v3769_v9, %v1037_v16  ;;  %v1039_v21 = vpop.f32.mrb[2].mxu1  ;;  %v3297_v16 = vld [vmem:[#allocation9 + $0x110] sm:$0xff]  }
 0x17c   :  { %v1521_v18 = vmax.f32 %v1457_v45, 0.0  ;;  %v1465_v20 = vadd.f32 %v3760_v5, %v966_v17  ;;  %v968_v22 = vpop.f32.mrb[3].mxu0  ;;  %v1523_v24 = vmax.f32 %v1459_v14, 0.0  ;;  %v1467_v25 = vadd.f32 %v3763_v7, %v1039_v21  ;;  %v1041_v27 = vpop.f32.mrb[3].mxu1  ;;  %v3299_v21 = vld [vmem:[#allocation9 + $0x190] sm:$0xff]  }
 0x17d   :  { %v1466_v26 = vadd.f32 %v3766_v8, %v968_v22  ;;  %v1524_v29 = vmax.f32 %v1460_v19, 0.0  ;;  %v1468_v31 = vadd.f32 %v3769_v9, %v1041_v27  ;;  %v1522_v32 = vmax.f32 %v1458_v15, 0.0  ;;  %v3300_v22 = vld [vmem:[#allocation9 + $0x158] sm:$0xff]  }
 0x17e   :  { %v1529_v30 = vmax.f32 %v1465_v20, 0.0  ;;  %v1531_v33 = vmax.f32 %v1467_v25, 0.0 }
 0x17f   :  { %v1530_v34 = vmax.f32 %v1466_v26, 0.0  ;;  %v1532_v36 = vmax.f32 %v1468_v31, 0.0 }
 0x180   :  { %v1585_v35 = vpack.c.bf16 %v1529_v30, %v1521_v18  ;;  %v1587_v37 = vpack.c.bf16 %v1531_v33, %v1523_v24 }
 0x181   :  { %v1586_v38 = vpack.c.bf16 %v1530_v34, %v1522_v32  ;;  %v972_v39 = vpop.f32.mrb[4].mxu0  ;;  %v1588_v42 = vpack.c.bf16 %v1532_v36, %v1524_v29  ;;  %v1045_v44 = vpop.f32.mrb[4].mxu1  ;;  %v3302_v29 = vld [vmem:[#allocation9 + $0x1d8] sm:$0xff]  }
 0x182   :  { %v1473_v43 = vadd.f32 %v3760_v5, %v972_v39  ;;  %v974_v46 = vpop.f32.mrb[5].mxu0  ;;  %v1475_v50 = vadd.f32 %v3763_v7, %v1045_v44  ;;  %v1047_v51 = vpop.f32.mrb[5].mxu1  ;;  %v3303_v44 = vld [vmem:[#allocation9 + $0x198] sm:$0xff]  }
 0x183   :  { %2168 = vmatprep.mubr.bf16.mxu0 %v1586_v38  ;;  %v1474_v48 = vadd.f32 %v3766_v8, %v974_v46  ;;  %v976_v49 = vpop.f32.mrb[6].mxu0  ;;  %2233 = vmatprep.mubr.bf16.mxu1 %v1588_v42  ;;  %v1476_v54 = vadd.f32 %v3769_v9, %v1047_v51  ;;  %v1049_v23 = vpop.f32.mrb[6].mxu1 }
 0x184   :  { %2169 = vmatmul.mubr.bf16.vlgmr.msra.gmra.mrb[32].mxu0 %v1585_v35  ;;  %v1537_v52 = vmax.f32 %v1473_v43, 0.0  ;;  %v1481_v10 = vadd.f32 %v3760_v5, %v976_v49  ;;  %v978_v53 = vpop.f32.mrb[7].mxu0  ;;  %2234 = vmatmul.mubr.bf16.vlgmr.msra.gmra.mrb[32].mxu1 %v1587_v37  ;;  %v1539_v56 = vmax.f32 %v1475_v50, 0.0  ;;  %v1483_v57 = vadd.f32 %v3763_v7, %v1049_v23  ;;  %v1051_v58 = vpop.f32.mrb[7].mxu1  ;;  %v3306_v49 = vld [vmem:[#allocation9 + $0x1e0] sm:$0xff]  }
 0x185   :  { %v1538_v55 = vmax.f32 %v1474_v48, 0.0  ;;  %v1482_v28 = vadd.f32 %v3766_v8, %v978_v53  ;;  %3072 = vmatpush3.bf16.msra.mxu0 %v3289_v40  ;;  %v1540_v61 = vmax.f32 %v1476_v54, 0.0  ;;  %v1484_v62 = vadd.f32 %v3769_v9, %v1051_v58  ;;  %3112 = vmatpush3.bf16.msra.mxu1 %v3291_v60  ;;  %v3301_v40 = vld [vmem:[#allocation9 + $0x118] sm:$0xff]   ;;  %v3304_v60 = vld [vmem:[#allocation9 + $0x160] sm:$0xff]  }
 0x186   :  { %v1545_v41 = vmax.f32 %v1481_v10, 0.0  ;;  %3073 = vmatprep.subr.bf16.mxu0 %v3292_v47  ;;  %v1547_v4 = vmax.f32 %v1483_v57, 0.0  ;;  %3113 = vmatprep.subr.bf16.mxu1 %v3294_v6  ;;  %v3305_v53 = vld [vmem:[#allocation9 + $0x120] sm:$0xff]   ;;  %v3308_v57 = vld [vmem:[#allocation9 + $0x168] sm:$0xff]  }
 0x187   :  { %v1546_v3 = vmax.f32 %v1482_v28, 0.0  ;;  %v1548_v12 = vmax.f32 %v1484_v62, 0.0  ;;  %v3307_v28 = vld [vmem:[#allocation9 + $0x1a0] sm:$0xff]   ;;  %v3310_v62 = vld [vmem:[#allocation9 + $0x1e8] sm:$0xff]  }
 0x188   :  { %v1593_v45 = vpack.c.bf16 %v1545_v41, %v1537_v52  ;;  %v1595_v14 = vpack.c.bf16 %v1547_v4, %v1539_v56 }
 0x189   :  { %v1594_v13 = vpack.c.bf16 %v1546_v3, %v1538_v55  ;;  %v982_v15 = vpop.f32.mrb[8].mxu0  ;;  %3074 = vmatpush3.bf16.msra.mxu0 %v3293_v59  ;;  %v1596_v17 = vpack.c.bf16 %v1548_v12, %v1540_v61  ;;  %v1055_v20 = vpop.f32.mrb[8].mxu1  ;;  %3114 = vmatpush3.bf16.msra.mxu1 %v3295_v0 }
 0x18a   :  { %v1489_v18 = vadd.f32 %v3760_v5, %v982_v15  ;;  %v984_v19 = vpop.f32.mrb[9].mxu0  ;;  %3075 = vmatprep.subr.bf16.mxu0 %v3296_v2  ;;  %v1491_v26 = vadd.f32 %v3763_v7, %v1055_v20  ;;  %v1057_v27 = vpop.f32.mrb[9].mxu1  ;;  %3115 = vmatprep.subr.bf16.mxu1 %v3298_v11  ;;  %v3312_v20 = vld [vmem:[#allocation9 + $0x170] sm:$0xff]  }
 0x18b   :  { %v1490_v24 = vadd.f32 %v3766_v8, %v984_v19  ;;  %v986_v25 = vpop.f32.mrb[10].mxu0  ;;  %2176 = vmatprep.mubr.bf16.mxu0 %v1594_v13  ;;  %v1492_v33 = vadd.f32 %v3769_v9, %v1057_v27  ;;  %v1059_v34 = vpop.f32.mrb[10].mxu1  ;;  %2241 = vmatprep.mubr.bf16.mxu1 %v1596_v17  ;;  %v3311_v19 = vld [vmem:[#allocation9 + $0x1a8] sm:$0xff]   ;;  %v3313_v27 = vld [vmem:[#allocation9 + $0x130] sm:$0xff]  }
 0x18c   :  { %v1553_v30 = vmax.f32 %v1489_v18, 0.0  ;;  %v1497_v31 = vadd.f32 %v3760_v5, %v986_v25  ;;  %v988_v32 = vpop.f32.mrb[11].mxu0  ;;  %2177 = vmatmul.mubr.bf16.gmra.mrb[36].mxu0 %v1593_v45  ;;  %v1555_v36 = vmax.f32 %v1491_v26, 0.0  ;;  %v1499_v38 = vadd.f32 %v3763_v7, %v1059_v34  ;;  %v1061_v39 = vpop.f32.mrb[11].mxu1  ;;  %2242 = vmatmul.mubr.bf16.gmra.mrb[36].mxu1 %v1595_v14 }
 0x18d   :  { %v1554_v35 = vmax.f32 %v1490_v24, 0.0  ;;  %v1498_v37 = vadd.f32 %v3766_v8, %v988_v32  ;;  %3076 = vmatpush3.bf16.msra.mxu0 %v3297_v16  ;;  %v1556_v43 = vmax.f32 %v1492_v33, 0.0  ;;  %v1500_v46 = vadd.f32 %v3769_v9, %v1061_v39  ;;  %3116 = vmatpush3.bf16.msra.mxu1 %v3299_v21  ;;  %v3309_v16 = vld [vmem:[#allocation9 + $0x128] sm:$0xff]   ;;  %v3314_v24 = vld [vmem:[#allocation9 + $0x1f0] sm:$0xff]   ;;  %v3317_v32 = vld [vmem:[#allocation9 + $0x138] sm:$0xff]  }
 0x18e   :  { %v1561_v42 = vmax.f32 %v1497_v31, 0.0  ;;  %3077 = vmatprep.subr.bf16.mxu0 %v3300_v22  ;;  %v1563_v48 = vmax.f32 %v1499_v38, 0.0  ;;  %3117 = vmatprep.subr.bf16.mxu1 %v3302_v29  ;;  %v3316_v31 = vld [vmem:[#allocation9 + $0x178] sm:$0xff]   ;;  %v1435_v34 = vsub.s32 4, %v3751_v63 }
 0x18f   :  { %v1562_v47 = vmax.f32 %v1498_v37, 0.0  ;;  %v1564_v51 = vmax.f32 %v1500_v46, 0.0  ;;  %v3319_v33 = vld [vmem:[#allocation9 + $0x1b8] sm:$0xff]   ;;  %v1447_v37 = vsub.s32 7, %v3751_v63 }
 0x190   :  { %v1601_v50 = vpack.c.bf16 %v1561_v42, %v1553_v30  ;;  %v1603_v52 = vpack.c.bf16 %v1563_v48, %v1555_v36  ;;  %v3315_v30 = vld [vmem:[#allocation9 + $0x1b0] sm:$0xff]   ;;  %v1439_v36 = vsub.s32 5, %v3751_v63  ;;  %v3808_v38 = vrot.slane %v3754_v1, %v1435_v34 }
 0x191   :  { %v1602_v6 = vpack.c.bf16 %v1562_v47, %v1554_v35  ;;  %v992_v10 = vpop.f32.mrb[12].mxu0  ;;  %3078 = vmatpush3.bf16.msra.mxu0 %v3301_v40  ;;  %v1604_v54 = vpack.c.bf16 %v1564_v51, %v1556_v43  ;;  %v1065_v56 = vpop.f32.mrb[12].mxu1  ;;  %3118 = vmatpush3.bf16.msra.mxu1 %v3303_v44  ;;  %v1443_v35 = vsub.s32 6, %v3751_v63  ;;  %v3817_v42 = vrot.slane %v3754_v1, %v1447_v37 }
 0x192   :  { %v1505_v23 = vadd.f32 %v3760_v5, %v992_v10  ;;  %v994_v55 = vpop.f32.mrb[13].mxu0  ;;  %3079 = vmatprep.subr.bf16.mxu0 %v3304_v60  ;;  %v1507_v41 = vadd.f32 %v3763_v7, %v1065_v56  ;;  %v1067_v61 = vpop.f32.mrb[13].mxu1  ;;  %3119 = vmatprep.subr.bf16.mxu1 %v3306_v49  ;;  %v3814_v40 = vrot.slane %v3754_v1, %v1439_v36 }
 0x193   :  { %v1506_v58 = vadd.f32 %v3766_v8, %v994_v55  ;;  %v996_v59 = vpop.f32.mrb[14].mxu0  ;;  %2184 = vmatprep.mubr.bf16.mxu0 %v1602_v6  ;;  %v1508_v4 = vadd.f32 %v3769_v9, %v1067_v61  ;;  %v1069_v11 = vpop.f32.mrb[14].mxu1  ;;  %2249 = vmatprep.mubr.bf16.mxu1 %v1604_v54  ;;  %v3811_v39 = vrot.slane %v3754_v1, %v1443_v35 }
 0x194   :  { %v1569_v0 = vmax.f32 %v1505_v23, 0.0  ;;  %v1513_v2 = vadd.f32 %v3760_v5, %v996_v59  ;;  %v998_v3 = vpop.f32.mrb[15].mxu0  ;;  %2185 = vmatmul.mubr.bf16.gmra.mrb[40].mxu0 %v1601_v50  ;;  %v1571_v12 = vmax.f32 %v1507_v41, 0.0  ;;  %v1515_v14 = vadd.f32 %v3763_v7, %v1069_v11  ;;  %v1071_v15 = vpop.f32.mrb[15].mxu1  ;;  %2250 = vmatmul.mubr.bf16.gmra.mrb[40].mxu1 %v1603_v52 }
 0x195   :  { %v1570_v45 = vmax.f32 %v1506_v58, 0.0  ;;  %v1514_v13 = vadd.f32 %v3766_v8, %v998_v3  ;;  %3080 = vmatpush3.bf16.msra.mxu0 %v3305_v53  ;;  %v1572_v18 = vmax.f32 %v1508_v4, 0.0  ;;  %v1516_v5 = vadd.f32 %v3769_v9, %v1071_v15  ;;  %3120 = vmatpush3.bf16.msra.mxu1 %v3307_v28  ;;  %v3318_v9 = vld [vmem:[#allocation9 + $0x1f8] sm:$0xff]  }
 0x196   :  { %v1577_v17 = vmax.f32 %v1513_v2, 0.0  ;;  %3081 = vmatprep.subr.bf16.mxu0 %v3308_v57  ;;  %v1579_v22 = vmax.f32 %v1515_v14, 0.0  ;;  %3121 = vmatprep.subr.bf16.mxu1 %v3310_v62 }
 0x197   :  { %v1578_v21 = vmax.f32 %v1514_v13, 0.0  ;;  %v1580_v8 = vmax.f32 %v1516_v5, 0.0 }
 0x198   :  { %v1609_v25 = vpack.c.bf16 %v1577_v17, %v1569_v0  ;;  %v1611_v7 = vpack.c.bf16 %v1579_v22, %v1571_v12 }
 0x199   :  { %v1610_v26 = vpack.c.bf16 %v1578_v21, %v1570_v45  ;;  %3082 = vmatpush3.bf16.msra.mxu0 %v3309_v16  ;;  %v1612_v29 = vpack.c.bf16 %v1580_v8, %v1572_v18  ;;  %3122 = vmatpush3.bf16.msra.mxu1 %v3311_v19 }
 0x19a   :  { %3083 = vmatprep.subr.bf16.mxu0 %v3312_v20  ;;  %3123 = vmatprep.subr.bf16.mxu1 %v3314_v24 }
 0x19b   :  { %2192 = vmatprep.mubr.bf16.mxu0 %v1610_v26  ;;  %2257 = vmatprep.mubr.bf16.mxu1 %v1612_v29 }
 0x19c   :  { %2193 = vmatmul.mubr.bf16.gmra.mrb[44].mxu0 %v1609_v25  ;;  %2258 = vmatmul.mubr.bf16.gmra.mrb[44].mxu1 %v1611_v7 }
 0x19d   :  { %3084 = vmatpush3.bf16.msra.mxu0 %v3313_v27  ;;  %3124 = vmatpush3.bf16.msra.mxu1 %v3315_v30 }
 0x19e   :  { %3085 = vmatprep.subr.bf16.mxu0 %v3316_v31  ;;  %3125 = vmatprep.subr.bf16.mxu1 %v3318_v9 }
 0x1a1   :  { %3086 = vmatpush3.bf16.msra.mxu0 %v3317_v32  ;;  %3126 = vmatpush3.bf16.msra.mxu1 %v3319_v33 }
 0x1ad   :  { %v1108_v43 = vpop.f32.mrb[16].mxu0  ;;  %v1181_v44 = vpop.f32.mrb[16].mxu1 }
 0x1ae   :  { %v1461_v46 = vadd.f32 %v3808_v38, %v1108_v43  ;;  %v1110_v60 = vpop.f32.mrb[17].mxu0  ;;  %v1463_v47 = vadd.f32 %v3811_v39, %v1181_v44  ;;  %v1183_v48 = vpop.f32.mrb[17].mxu1 }
 0x1af   :  { %v1462_v63 = vadd.f32 %v3814_v40, %v1110_v60  ;;  %v1112_v49 = vpop.f32.mrb[18].mxu0  ;;  %v1464_v50 = vadd.f32 %v3817_v42, %v1183_v48  ;;  %v1185_v6 = vpop.f32.mrb[18].mxu1 }
 0x1b0   :  { %v1469_v51 = vadd.f32 %v3808_v38, %v1112_v49  ;;  %v1114_v52 = vpop.f32.mrb[19].mxu0  ;;  %v1527_v10 = vmax.f32 %v1463_v47, 0.0  ;;  %v1471_v1 = vadd.f32 %v3811_v39, %v1185_v6  ;;  %v1187_v54 = vpop.f32.mrb[19].mxu1  ;;  %v1525_v23 = vmax.f32 %v1461_v46, 0.0 }
 0x1b1   :  { %v1470_v53 = vadd.f32 %v3814_v40, %v1114_v52  ;;  %v1528_v55 = vmax.f32 %v1464_v50, 0.0  ;;  %v1472_v28 = vadd.f32 %v3817_v42, %v1187_v54  ;;  %v1526_v57 = vmax.f32 %v1462_v63, 0.0 }
 0x1b2   :  { %v1533_v56 = vmax.f32 %v1469_v51, 0.0  ;;  %v1535_v58 = vmax.f32 %v1471_v1, 0.0 }
 0x1b3   :  { %v1534_v59 = vmax.f32 %v1470_v53, 0.0  ;;  %v1536_v61 = vmax.f32 %v1472_v28, 0.0 }
 0x1b4   :  { %v1589_v41 = vpack.c.bf16 %v1533_v56, %v1525_v23  ;;  %v1591_v62 = vpack.c.bf16 %v1535_v58, %v1527_v10 }
 0x1b5   :  { %v1590_v0 = vpack.c.bf16 %v1534_v59, %v1526_v57  ;;  %v1118_v2 = vpop.f32.mrb[20].mxu0  ;;  %v1592_v3 = vpack.c.bf16 %v1536_v61, %v1528_v55  ;;  %v1191_v11 = vpop.f32.mrb[20].mxu1 }
 0x1b6   :  { %v1477_v4 = vadd.f32 %v3808_v38, %v1118_v2  ;;  %v1120_v45 = vpop.f32.mrb[21].mxu0  ;;  %v1479_v12 = vadd.f32 %v3811_v39, %v1191_v11  ;;  %v1193_v14 = vpop.f32.mrb[21].mxu1 }
 0x1b7   :  { %v1478_v13 = vadd.f32 %v3814_v40, %v1120_v45  ;;  %v1122_v15 = vpop.f32.mrb[22].mxu0  ;;  %2298 = vmatprep.mubr.bf16.mxu0 %v1590_v0  ;;  %v1480_v16 = vadd.f32 %v3817_v42, %v1193_v14  ;;  %v1195_v18 = vpop.f32.mrb[22].mxu1  ;;  %2363 = vmatprep.mubr.bf16.mxu1 %v1592_v3 }
 0x1b8   :  { %v1485_v17 = vadd.f32 %v3808_v38, %v1122_v15  ;;  %v1124_v5 = vpop.f32.mrb[23].mxu0  ;;  %2299 = vmatmul.mubr.bf16.vlgmr.msra.gmra.mrb[48].mxu0 %v1589_v41  ;;  %v1543_v19 = vmax.f32 %v1479_v12, 0.0  ;;  %v1487_v20 = vadd.f32 %v3811_v39, %v1195_v18  ;;  %v1197_v22 = vpop.f32.mrb[23].mxu1  ;;  %2364 = vmatmul.mubr.bf16.vlgmr.msra.gmra.mrb[48].mxu1 %v1591_v62  ;;  %v1541_v24 = vmax.f32 %v1477_v4, 0.0 }
 0x1b9   :  { %v1486_v21 = vadd.f32 %v3814_v40, %v1124_v5  ;;  %v1544_v25 = vmax.f32 %v1480_v16, 0.0  ;;  %v1488_v26 = vadd.f32 %v3817_v42, %v1197_v22  ;;  %v1542_v7 = vmax.f32 %v1478_v13, 0.0 }
 0x1ba   :  { %v1549_v8 = vmax.f32 %v1485_v17, 0.0  ;;  %v1551_v27 = vmax.f32 %v1487_v20, 0.0 }
 0x1bb   :  { %v1550_v29 = vmax.f32 %v1486_v21, 0.0  ;;  %v1552_v31 = vmax.f32 %v1488_v26, 0.0 }
 0x1bc   :  { %v1597_v30 = vpack.c.bf16 %v1549_v8, %v1541_v24  ;;  %v1599_v9 = vpack.c.bf16 %v1551_v27, %v1543_v19 }
 0x1bd   :  { %v1598_v32 = vpack.c.bf16 %v1550_v29, %v1542_v7  ;;  %v1128_v33 = vpop.f32.mrb[24].mxu0  ;;  %v1600_v34 = vpack.c.bf16 %v1552_v31, %v1544_v25  ;;  %v1201_v36 = vpop.f32.mrb[24].mxu1  ;;  %v3324_v31 = vld [vmem:[#allocation11 + $0x20] sm:$0xff]  }
 0x1be   :  { %v1493_v35 = vadd.f32 %v3808_v38, %v1128_v33  ;;  %v1130_v37 = vpop.f32.mrb[25].mxu0  ;;  %v1495_v43 = vadd.f32 %v3811_v39, %v1201_v36  ;;  %v1203_v44 = vpop.f32.mrb[25].mxu1  ;;  %v3327_v33 = vld [vmem:[#allocation11 + $0x38] sm:$0xff]   ;;  %v3330_v36 = vld [vmem:[#allocation12 + $0x10] sm:$0xff]  }
 0x1bf   :  { %v1494_v46 = vadd.f32 %v3814_v40, %v1130_v37  ;;  %v1132_v60 = vpop.f32.mrb[26].mxu0  ;;  %2306 = vmatprep.mubr.bf16.mxu0 %v1598_v32  ;;  %v1496_v47 = vadd.f32 %v3817_v42, %v1203_v44  ;;  %v1205_v48 = vpop.f32.mrb[26].mxu1  ;;  %2371 = vmatprep.mubr.bf16.mxu1 %v1600_v34  ;;  %v3326_v32 = vld [vmem:[#allocation11 + $0x30] sm:$0xff]   ;;  %v3328_v34 = vld [vmem:[#allocation12] sm:$0xff]   ;;  %v3331_v37 = vld [vmem:[#allocation12 + $0x18] sm:$0xff]  }
 0x1c0   :  { %v1501_v63 = vadd.f32 %v3808_v38, %v1132_v60  ;;  %v1134_v49 = vpop.f32.mrb[27].mxu0  ;;  %2307 = vmatmul.mubr.bf16.gmra.mrb[52].mxu0 %v1597_v30  ;;  %v1559_v50 = vmax.f32 %v1495_v43, 0.0  ;;  %v1503_v51 = vadd.f32 %v3811_v39, %v1205_v48  ;;  %v1207_v52 = vpop.f32.mrb[27].mxu1  ;;  %2372 = vmatmul.mubr.bf16.gmra.mrb[52].mxu1 %v1599_v9  ;;  %v1557_v10 = vmax.f32 %v1493_v35, 0.0  ;;  %v3322_v30 = vld [vmem:[#allocation11 + $0x10] sm:$0xff]   ;;  %v3325_v9 = vld [vmem:[#allocation11 + $0x28] sm:$0xff]  }
 0x1c1   :  { %v1502_v6 = vadd.f32 %v3814_v40, %v1134_v49  ;;  %v1560_v1 = vmax.f32 %v1496_v47, 0.0  ;;  %v1504_v54 = vadd.f32 %v3817_v42, %v1207_v52  ;;  %v1558_v23 = vmax.f32 %v1494_v46, 0.0  ;;  %v3329_v35 = vld [vmem:[#allocation12 + $0x8] sm:$0xff]   ;;  %3199 = vmatprep.subr.bf16.mxu1 %v3328_v34  ;;  %v3332_v43 = vld [vmem:[#allocation12 + $0x20] sm:$0xff]   ;;  %v2900_v47 = vld [vmem:[%s3897_s4] ss:$0 sm:$0xff] }
 0x1c2   :  { %v1565_v53 = vmax.f32 %v1501_v63, 0.0  ;;  %v1567_v55 = vmax.f32 %v1503_v51, 0.0  ;;  %3200 = vmatpush3.bf16.msra.mxu1 %v3328_v34  ;;  %v3333_v46 = vld [vmem:[#allocation12 + $0x28] sm:$0xff]  }
 0x1c3   :  { %v1566_v56 = vmax.f32 %v1502_v6, 0.0  ;;  %v1568_v57 = vmax.f32 %v1504_v54, 0.0  ;;  %3201 = vmatprep.subr.bf16.mxu1 %v3329_v35 }
 0x1c4   :  { %v1605_v28 = vpack.c.bf16 %v1565_v53, %v1557_v10  ;;  %v1607_v58 = vpack.c.bf16 %v1567_v55, %v1559_v50 }
 0x1c5   :  { %v1606_v59 = vpack.c.bf16 %v1566_v56, %v1558_v23  ;;  %v1138_v41 = vpop.f32.mrb[28].mxu0  ;;  %v1608_v61 = vpack.c.bf16 %v1568_v57, %v1560_v1  ;;  %v1211_v0 = vpop.f32.mrb[28].mxu1 }
 0x1c6   :  { %v1509_v62 = vadd.f32 %v3808_v38, %v1138_v41  ;;  %v1140_v2 = vpop.f32.mrb[29].mxu0  ;;  %v1511_v3 = vadd.f32 %v3811_v39, %v1211_v0  ;;  %v1213_v11 = vpop.f32.mrb[29].mxu1  ;;  %3202 = vmatpush3.bf16.msra.mxu1 %v3329_v35 }
 0x1c7   :  { %v1510_v4 = vadd.f32 %v3814_v40, %v1140_v2  ;;  %v1142_v45 = vpop.f32.mrb[30].mxu0  ;;  %2314 = vmatprep.mubr.bf16.mxu0 %v1606_v59  ;;  %v1512_v12 = vadd.f32 %v3817_v42, %v1213_v11  ;;  %v1215_v14 = vpop.f32.mrb[30].mxu1  ;;  %2379 = vmatprep.mubr.bf16.mxu1 %v1608_v61 }
 0x1c8   :  { %v1517_v13 = vadd.f32 %v3808_v38, %v1142_v45  ;;  %v1144_v15 = vpop.f32.mrb[31].mxu0  ;;  %2315 = vmatmul.mubr.bf16.gmra.mrb[56].mxu0 %v1605_v28  ;;  %v1575_v16 = vmax.f32 %v1511_v3, 0.0  ;;  %v1519_v17 = vadd.f32 %v3811_v39, %v1215_v14  ;;  %v1217_v5 = vpop.f32.mrb[31].mxu1  ;;  %2380 = vmatmul.mubr.bf16.gmra.mrb[56].mxu1 %v1607_v58  ;;  %v1573_v19 = vmax.f32 %v1509_v62, 0.0  ;;  %v3320_v39 = vld [vmem:[#allocation11] sm:$0xff]  }
 0x1c9   :  { %v1518_v18 = vadd.f32 %v3814_v40, %v1144_v15  ;;  %v1576_v20 = vmax.f32 %v1512_v12, 0.0  ;;  %v1520_v22 = vadd.f32 %v3817_v42, %v1217_v5  ;;  %v1574_v24 = vmax.f32 %v1510_v4, 0.0  ;;  %v3321_v40 = vld [vmem:[#allocation11 + $0x8] sm:$0xff]   ;;  %3175 = vmatprep.subr.bf16.mxu0 %v3320_v39  ;;  %v3323_v42 = vld [vmem:[#allocation11 + $0x18] sm:$0xff]   ;;  %3203 = vmatprep.subr.bf16.mxu1 %v3330_v36 }
 0x1ca   :  { %v1581_v21 = vmax.f32 %v1517_v13, 0.0  ;;  %v1583_v25 = vmax.f32 %v1519_v17, 0.0  ;;  %3176 = vmatpush3.bf16.msra.mxu0 %v3320_v39  ;;  %3204 = vmatpush3.bf16.msra.mxu1 %v3330_v36 }
 0x1cb   :  { %v1582_v8 = vmax.f32 %v1518_v18, 0.0  ;;  %v1584_v26 = vmax.f32 %v1520_v22, 0.0  ;;  %3177 = vmatprep.subr.bf16.mxu0 %v3321_v40  ;;  %3205 = vmatprep.subr.bf16.mxu1 %v3331_v37 }
 0x1cc   :  { %v1613_v38 = vpack.c.bf16 %v1581_v21, %v1573_v19  ;;  %v1615_v7 = vpack.c.bf16 %v1583_v25, %v1575_v16 }
 0x1cd   :  { %v1614_v27 = vpack.c.bf16 %v1582_v8, %v1574_v24  ;;  %v1616_v29 = vpack.c.bf16 %v1584_v26, %v1576_v20 }
 0x1ce   :  { %3178 = vmatpush3.bf16.msra.mxu0 %v3321_v40  ;;  %3206 = vmatpush3.bf16.msra.mxu1 %v3331_v37 }
 0x1cf   :  { %2322 = vmatprep.mubr.bf16.mxu0 %v1614_v27  ;;  %2387 = vmatprep.mubr.bf16.mxu1 %v1616_v29 }
 0x1d0   :  { %2323 = vmatmul.mubr.bf16.gmra.mrb[60].mxu0 %v1613_v38  ;;  %2388 = vmatmul.mubr.bf16.gmra.mrb[60].mxu1 %v1615_v7 }
 0x1d1   :  { %3179 = vmatprep.subr.bf16.mxu0 %v3322_v30  ;;  %3207 = vmatprep.subr.bf16.mxu1 %v3332_v43 }
 0x1d2   :  { %3180 = vmatpush3.bf16.msra.mxu0 %v3322_v30  ;;  %3208 = vmatpush3.bf16.msra.mxu1 %v3332_v43 }
 0x1d3   :  { %3181 = vmatprep.subr.bf16.mxu0 %v3323_v42  ;;  %3209 = vmatprep.subr.bf16.mxu1 %v3333_v46 }
 0x1d6   :  { %3182 = vmatpush3.bf16.msra.mxu0 %v3323_v42  ;;  %3210 = vmatpush3.bf16.msra.mxu1 %v3333_v46 }
 0x1d7   :  { %3183 = vmatprep.subr.bf16.mxu0 %v3324_v31 }
 0x1da   :  { %3184 = vmatpush3.bf16.msra.mxu0 %v3324_v31 }
 0x1db   :  { %3185 = vmatprep.subr.bf16.mxu0 %v3325_v9 }
 0x1de   :  { %3186 = vmatpush3.bf16.msra.mxu0 %v3325_v9 }
 0x1df   :  { %3187 = vmatprep.subr.bf16.mxu0 %v3326_v32 }
 0x1e2   :  { %3188 = vmatpush3.bf16.msra.mxu0 %v3326_v32 }
 0x1e3   :  { %3189 = vmatprep.subr.bf16.mxu0 %v3327_v33 }
 0x1e6   :  { %3190 = vmatpush3.bf16.msra.mxu0 %v3327_v33 }
 0x257   :  { %v3007_v44 = vpop.f32.mrb[32].mxu0  ;;  %v3047_v60 = vpop.f32.mrb[32].mxu1 }
 0x258   :  { %v3008_v63 = vpop.f32.mrb[33].mxu0  ;;  %v3048_v49 = vpop.f32.mrb[33].mxu1 }
 0x259   :  { %v3009_v48 = vadd.f32 %v3008_v63, %v3007_v44  ;;  %v3010_v50 = vpop.f32.mrb[34].mxu0  ;;  %v3049_v51 = vadd.f32 %v3048_v49, %v3047_v60  ;;  %v3050_v6 = vpop.f32.mrb[34].mxu1 }
 0x25a   :  { %v3011_v52 = vpop.f32.mrb[35].mxu0  ;;  %v3051_v53 = vpop.f32.mrb[35].mxu1 }
 0x25b   :  { %v2171_v10 = vadd.f32 %v3009_v48, %v2900_v47  ;;  %v3012_v1 = vadd.f32 %v3011_v52, %v3010_v50  ;;  %v3052_v54 = vadd.f32 %v3051_v53, %v3050_v6 }
 0x25d   :  { %v2236_v23 = vadd.f32 %v3049_v51, %v2171_v10  ;;  %v2174_v55 = vadd.f32 %v3012_v1, %v2900_v47 }
 0x25f   :  { %v3854_v56 = vadd.f32 %v3052_v54, %v2174_v55  ;;  %v3013_v28 = vpop.f32.mrb[36].mxu0  ;;  %v3053_v58 = vpop.f32.mrb[36].mxu1 }
 0x260   :  { %v3014_v57 = vpop.f32.mrb[37].mxu0  ;;  %v3054_v61 = vpop.f32.mrb[37].mxu1 }
 0x261   :  { %v3015_v59 = vadd.f32 %v3014_v57, %v3013_v28  ;;  %v3016_v41 = vpop.f32.mrb[38].mxu0  ;;  %v3055_v0 = vadd.f32 %v3054_v61, %v3053_v58  ;;  %v3056_v2 = vpop.f32.mrb[38].mxu1 }
 0x262   :  { %v3017_v62 = vpop.f32.mrb[39].mxu0  ;;  %v3057_v11 = vpop.f32.mrb[39].mxu1 }
 0x263   :  { %v2179_v3 = vadd.f32 %v3015_v59, %v2900_v47  ;;  %v3018_v4 = vadd.f32 %v3017_v62, %v3016_v41  ;;  %v3058_v45 = vadd.f32 %v3057_v11, %v3056_v2 }
 0x265   :  { %v2182_v12 = vadd.f32 %v3018_v4, %v2900_v47  ;;  %v2244_v13 = vadd.f32 %v3055_v0, %v2179_v3 }
 0x267   :  { %v3856_v14 = vadd.f32 %v3058_v45, %v2182_v12  ;;  %v3019_v15 = vpop.f32.mrb[40].mxu0  ;;  %v3059_v17 = vpop.f32.mrb[40].mxu1 }
 0x268   :  { %v3020_v16 = vpop.f32.mrb[41].mxu0  ;;  %v3060_v19 = vpop.f32.mrb[41].mxu1 }
 0x269   :  { %v3021_v18 = vadd.f32 %v3020_v16, %v3019_v15  ;;  %v3022_v5 = vpop.f32.mrb[42].mxu0  ;;  %v3061_v21 = vadd.f32 %v3060_v19, %v3059_v17  ;;  %v3062_v22 = vpop.f32.mrb[42].mxu1 }
 0x26a   :  { %v3023_v20 = vpop.f32.mrb[43].mxu0  ;;  %v3063_v8 = vpop.f32.mrb[43].mxu1 }
 0x26b   :  { %v2187_v24 = vadd.f32 %v3021_v18, %v2900_v47  ;;  %v3024_v25 = vadd.f32 %v3023_v20, %v3022_v5  ;;  %v3064_v38 = vadd.f32 %v3063_v8, %v3062_v22 }
 0x26d   :  { %v2190_v26 = vadd.f32 %v3024_v25, %v2900_v47  ;;  %v3858_v7 = vadd.f32 %v3061_v21, %v2187_v24 }
 0x26f   :  { %v3860_v27 = vadd.f32 %v3064_v38, %v2190_v26  ;;  %v3025_v29 = vpop.f32.mrb[44].mxu0  ;;  %v3065_v40 = vpop.f32.mrb[44].mxu1 }
 0x270   :  { %v3026_v39 = vpop.f32.mrb[45].mxu0  ;;  %v3066_v31 = vpop.f32.mrb[45].mxu1 }
 0x271   :  { %v3027_v30 = vadd.f32 %v3026_v39, %v3025_v29  ;;  %v3028_v42 = vpop.f32.mrb[46].mxu0  ;;  %v3067_v32 = vadd.f32 %v3066_v31, %v3065_v40  ;;  %v3068_v33 = vpop.f32.mrb[46].mxu1 }
 0x272   :  { %v3029_v9 = vpop.f32.mrb[47].mxu0  ;;  %v3069_v36 = vpop.f32.mrb[47].mxu1 }
 0x273   :  { %v2195_v34 = vadd.f32 %v3027_v30, %v2900_v47  ;;  %v3030_v35 = vadd.f32 %v3029_v9, %v3028_v42  ;;  %v3070_v37 = vadd.f32 %v3069_v36, %v3068_v33 }
 0x275   :  { %v2198_v43 = vadd.f32 %v3030_v35, %v2900_v47  ;;  %v3862_v46 = vadd.f32 %v3067_v32, %v2195_v34 }
 0x277   :  { %v3864_v44 = vadd.f32 %v3070_v37, %v2198_v43 }
 0x28b   :  { %v3087_v60 = vpop.f32.mrb[48].mxu0  ;;  %v3127_v63 = vpop.f32.mrb[48].mxu1 }
 0x28c   :  { %v3088_v48 = vpop.f32.mrb[49].mxu0  ;;  %v3128_v50 = vpop.f32.mrb[49].mxu1 }
 0x28d   :  { %v3089_v49 = vadd.f32 %v3088_v48, %v3087_v60  ;;  %v3090_v51 = vpop.f32.mrb[50].mxu0  ;;  %v3129_v6 = vadd.f32 %v3128_v50, %v3127_v63  ;;  %v3130_v52 = vpop.f32.mrb[50].mxu1 }
 0x28e   :  { %v3091_v10 = vpop.f32.mrb[51].mxu0  ;;  %v3131_v54 = vpop.f32.mrb[51].mxu1 }
 0x28f   :  { %v2301_v1 = vadd.f32 %v3089_v49, %v2236_v23  ;;  %v3092_v53 = vadd.f32 %v3091_v10, %v3090_v51  ;;  %v3132_v55 = vadd.f32 %v3131_v54, %v3130_v52 }
 0x291   :  { %v2366_v28 = vadd.f32 %v3129_v6, %v2301_v1  ;;  %v2304_v47 = vadd.f32 %v3092_v53, %v3854_v56 }
 0x293   :  { %v2369_v57 = vadd.f32 %v3132_v55, %v2304_v47  ;;  %v3093_v58 = vpop.f32.mrb[52].mxu0  ;;  %v3133_v59 = vpop.f32.mrb[52].mxu1  ;;  %v2396_v61 = vmax.f32 %v2366_v28, 0.0  ;;  %v3334_v47 = vld [vmem:[#allocation12 + $0x30] sm:$0xff]  }
 0x294   :  { %v3094_v41 = vpop.f32.mrb[53].mxu0  ;;  %v3134_v2 = vpop.f32.mrb[53].mxu1  ;;  %3211 = vmatprep.subr.bf16.mxu1 %v3334_v47 }
 0x295   :  { %v2397_v62 = vmax.f32 %v2369_v57, 0.0  ;;  %v3095_v0 = vadd.f32 %v3094_v41, %v3093_v58  ;;  %v3096_v3 = vpop.f32.mrb[54].mxu0  ;;  %v3135_v4 = vadd.f32 %v3134_v2, %v3133_v59  ;;  %v3136_v11 = vpop.f32.mrb[54].mxu1  ;;  %3212 = vmatpush3.bf16.msra.mxu1 %v3334_v47  ;;  %v3335_v57 = vld [vmem:[#allocation12 + $0x38] sm:$0xff]  }
 0x296   :  { %v3097_v45 = vpop.f32.mrb[55].mxu0  ;;  %v3137_v15 = vpop.f32.mrb[55].mxu1  ;;  %3213 = vmatprep.subr.bf16.mxu1 %v3335_v57 }
 0x297   :  { %v2309_v12 = vadd.f32 %v3095_v0, %v2244_v13  ;;  %v3098_v23 = vadd.f32 %v3097_v45, %v3096_v3  ;;  %v2404_v16 = vpack.c.bf16 %v2397_v62, %v2396_v61  ;;  %v3138_v17 = vadd.f32 %v3137_v15, %v3136_v11 }
 0x299   :  { %v2374_v18 = vadd.f32 %v3135_v4, %v2309_v12  ;;  %v2312_v56 = vadd.f32 %v3098_v23, %v3856_v14  ;;  %3191 = vmatprep.mubr.bf16.mxu0 %v2404_v16  ;;  %3214 = vmatpush3.bf16.msra.mxu1 %v3335_v57 }
 0x29b   :  { %v2377_v5 = vadd.f32 %v3138_v17, %v2312_v56  ;;  %v3099_v19 = vpop.f32.mrb[56].mxu0  ;;  %v3139_v20 = vpop.f32.mrb[56].mxu1  ;;  %v2398_v22 = vmax.f32 %v2374_v18, 0.0 }
 0x29c   :  { %v3100_v21 = vpop.f32.mrb[57].mxu0  ;;  %v3140_v8 = vpop.f32.mrb[57].mxu1 }
 0x29d   :  { %v2399_v24 = vmax.f32 %v2377_v5, 0.0  ;;  %v3101_v25 = vadd.f32 %v3100_v21, %v3099_v19  ;;  %v3102_v38 = vpop.f32.mrb[58].mxu0  ;;  %v3141_v26 = vadd.f32 %v3140_v8, %v3139_v20  ;;  %v3142_v29 = vpop.f32.mrb[58].mxu1 }
 0x29e   :  { %v3103_v13 = vpop.f32.mrb[59].mxu0  ;;  %v3143_v42 = vpop.f32.mrb[59].mxu1 }
 0x29f   :  { %v2405_v39 = vpack.c.bf16 %v2399_v24, %v2398_v22  ;;  %v2317_v40 = vadd.f32 %v3101_v25, %v3858_v7  ;;  %v3104_v30 = vadd.f32 %v3103_v13, %v3102_v38  ;;  %v3144_v31 = vadd.f32 %v3143_v42, %v3142_v29 }
 0x2a1   :  { %v2382_v14 = vadd.f32 %v3141_v26, %v2317_v40  ;;  %v2320_v9 = vadd.f32 %v3104_v30, %v3860_v27  ;;  %3192 = vmatmul.mubr.bf16.vlgmr.msra.gmra.mrb[64].mxu0 %v2405_v39  ;;  %v2974_v26 = vld [vmem:[%s3901_s8] ss:$0 sm:$0xff]  ;;  %s3544_s8 = smov [#allocation14]  }
 0x2a2   :  { %s2753_s22 = sshll.u32 %s3544_s8, 4  ;;  %s2754_s22 = int_to_ptr.vmem [resolvable:$true] %s2753_s22 }
 0x2a3   :  { %v2385_v32 = vadd.f32 %v3144_v31, %v2320_v9  ;;  %v3105_v33 = vpop.f32.mrb[60].mxu0  ;;  %v3145_v34 = vpop.f32.mrb[60].mxu1  ;;  %v2400_v36 = vmax.f32 %v2382_v14, 0.0  ;;  %s3500_s23 = scalar_lea.vmem %s2754_s22, 1024  ;;  %p3505_p7 = scmp.lt.s32.totalorder %s2754_s22, %s2754_s22 }
 0x2a4   :  { %v3106_v35 = vpop.f32.mrb[61].mxu0  ;;  %v3146_v60 = vpop.f32.mrb[61].mxu1  ;;  %p3501_p6 = scmp.ne.s32.totalorder %s2754_s22, %s3500_s23  ;;  %p3506_p8 = scmp.lt.s32.totalorder %s3500_s23, %s3500_s23 }
 0x2a5   :  { %v2401_v37 = vmax.f32 %v2385_v32, 0.0  ;;  %v3107_v43 = vadd.f32 %v3106_v35, %v3105_v33  ;;  %v3108_v63 = vpop.f32.mrb[62].mxu0  ;;  %v3147_v48 = vadd.f32 %v3146_v60, %v3145_v34  ;;  %v3148_v49 = vpop.f32.mrb[62].mxu1 }
 0x2a6   :  { %v3109_v50 = vpop.f32.mrb[63].mxu0  ;;  %v3149_v6 = vpop.f32.mrb[63].mxu1  ;;  %p3507_p9 = por %p3506_p8, %p3505_p7 }
 0x2a7   :  { %v2325_v7 = vadd.f32 %v3107_v43, %v3862_v46  ;;  %v3110_v51 = vadd.f32 %v3109_v50, %v3108_v63  ;;  %v2406_v52 = vpack.c.bf16 %v2401_v37, %v2400_v36  ;;  %v3150_v10 = vadd.f32 %v3149_v6, %v3148_v49  ;;  %v2965_v46 = vld [vmem:[%s3899_s6] ss:$0 sm:$0xff] }
 0x2a8   :  { %p3508_p10 = pnand %p3507_p9, %p3501_p6 }
 0x2a9   :  { %v2390_v27 = vadd.f32 %v3147_v48, %v2325_v7  ;;  %v2328_v1 = vadd.f32 %v3110_v51, %v3864_v44  ;;  %3195 = vmatprep.mubr.bf16.mxu0 %v2406_v52 }
 0x2ab   :  { %v2393_v53 = vadd.f32 %v3150_v10, %v2328_v1  ;;  %v2402_v54 = vmax.f32 %v2390_v27, 0.0 }
 0x2ad   :  { %v2403_v55 = vmax.f32 %v2393_v53, 0.0 }
 0x2af   :  { %v2407_v28 = vpack.c.bf16 %v2403_v55, %v2402_v54 }
 0x2b1   :  { %3196 = vmatmul.mubr.bf16.gmra.mrb[68].mxu0 %v2407_v28 }
 0x374   :  { %v3193_v58 = vpop.f32.mrb[64].mxu0 }
 0x375   :  { %v2522_v59 = vadd.f32 %v3193_v58, %v2965_v46  ;;  %v2513_v41 = vpop.f32.mrb[65].mxu0 }
 0x376   :  { %v2514_v44 = vadd.f32 %v2965_v46, %v2513_v41  ;;  %v3194_v61 = vpop.f32.mrb[66].mxu0 }
 0x377   :  { %v2525_v62 = vadd.f32 %v3194_v61, %v2965_v46  ;;  %v2516_v0 = vpop.f32.mrb[67].mxu0  ;;  %v2546_v3 = vmax.f32 %v2522_v59, 0.0 }
 0x378   :  { %v2517_v2 = vadd.f32 %v2965_v46, %v2516_v0  ;;  %v2544_v11 = vmax.f32 %v2514_v44, 0.0 }
 0x379   :  { %v2547_v4 = vmax.f32 %v2525_v62, 0.0 }
 0x37a   :  { %v2545_v45 = vmax.f32 %v2517_v2, 0.0 }
 0x37b   :  { %v2553_v12 = vpack.c.bf16 %v2547_v4, %v2546_v3 }
 0x37c   :  { %v2552_v23 = vpack.c.bf16 %v2545_v45, %v2544_v11 }
 0x37e   :  { %3215 = vmatprep.mubr.bf16.mxu1 %v2552_v23 }
 0x37f   :  { %3216 = vmatmul.mubr.bf16.vlgmr.msra.gmra.mrb[64].mxu1 %v2553_v12 }
 0x384   :  { %v3197_v15 = vpop.f32.mrb[68].mxu0 }
 0x385   :  { %v2538_v16 = vadd.f32 %v3197_v15, %v2965_v46  ;;  %v2529_v17 = vpop.f32.mrb[69].mxu0 }
 0x386   :  { %v2530_v18 = vadd.f32 %v2965_v46, %v2529_v17  ;;  %v3198_v56 = vpop.f32.mrb[70].mxu0 }
 0x387   :  { %v2541_v5 = vadd.f32 %v3198_v56, %v2965_v46  ;;  %v2532_v19 = vpop.f32.mrb[71].mxu0  ;;  %v2550_v21 = vmax.f32 %v2538_v16, 0.0 }
 0x388   :  { %v2533_v20 = vadd.f32 %v2965_v46, %v2532_v19  ;;  %v2548_v24 = vmax.f32 %v2530_v18, 0.0 }
 0x389   :  { %v2551_v22 = vmax.f32 %v2541_v5, 0.0 }
 0x38a   :  { %v2549_v25 = vmax.f32 %v2533_v20, 0.0 }
 0x38b   :  { %v2555_v8 = vpack.c.bf16 %v2551_v22, %v2550_v21 }
 0x38c   :  { %v2554_v38 = vpack.c.bf16 %v2549_v25, %v2548_v24 }
 0x38e   :  { %3219 = vmatprep.mubr.bf16.mxu1 %v2554_v38 }
 0x38f   :  { %3220 = vmatmul.mubr.bf16.gmra.mrb[68].mxu1 %v2555_v8 }
 0x452   :  { %v3217_v29 = vpop.f32.mrb[64].mxu1 }
 0x453   :  { %v2670_v13 = vadd.f32 %v3217_v29, %v2974_v26  ;;  %v2661_v39 = vpop.f32.mrb[65].mxu1 }
 0x454   :  { %v2662_v40 = vadd.f32 %v2974_v26, %v2661_v39  ;;  %v3218_v30 = vpop.f32.mrb[66].mxu1 }
 0x455   :  { %v2985_v42 = vmul.f32 -1.442695, %v2670_v13  ;;  %v2673_v31 = vadd.f32 %v3218_v30, %v2974_v26  ;;  %v2664_v14 = vpop.f32.mrb[67].mxu1 }
 0x456   :  { %v2983_v9 = vmul.f32 -1.442695, %v2662_v40  ;;  %v2665_v32 = vadd.f32 %v2974_v26, %v2664_v14 }
 0x457   :  { %3336 = vpow2.f32 %v2985_v42  ;;  %v2986_v33 = vmul.f32 -1.442695, %v2673_v31 }
 0x458   :  { %3338 = vpow2.f32 %v2983_v9  ;;  %v2984_v34 = vmul.f32 -1.442695, %v2665_v32 }
 0x459   :  { %3340 = vpow2.f32 %v2986_v33 }
 0x45a   :  { %3342 = vpow2.f32 %v2984_v34 }
 0x461   :  { %v3337_v35 = vpop.eup %3336 }
 0x462   :  { %v3339_v36 = vpop.eup %3338  ;;  %v2718_v37 = vadd.f32 1.0, %v3337_v35  ;;  %v3221_v43 = vpop.f32.mrb[68].mxu1 }
 0x463   :  { %v3341_v60 = vpop.eup %3340  ;;  %v2716_v63 = vadd.f32 1.0, %v3339_v36  ;;  %v2686_v48 = vadd.f32 %v3221_v43, %v2974_v26  ;;  %v2677_v49 = vpop.f32.mrb[69].mxu1 }
 0x464   :  { %v3343_v50 = vpop.eup %3342  ;;  %3344 = vrcp.f32 %v2718_v37  ;;  %v2719_v7 = vadd.f32 1.0, %v3341_v60  ;;  %v2678_v51 = vadd.f32 %v2974_v26, %v2677_v49  ;;  %v3222_v6 = vpop.f32.mrb[70].mxu1 }
 0x465   :  { %3346 = vrcp.f32 %v2716_v63  ;;  %v2717_v52 = vadd.f32 1.0, %v3343_v50  ;;  %v2989_v10 = vmul.f32 -1.442695, %v2686_v48  ;;  %v2689_v27 = vadd.f32 %v3222_v6, %v2974_v26  ;;  %v2680_v1 = vpop.f32.mrb[71].mxu1 }
 0x466   :  { %3348 = vrcp.f32 %v2719_v7  ;;  %v2987_v53 = vmul.f32 -1.442695, %v2678_v51  ;;  %v2681_v54 = vadd.f32 %v2974_v26, %v2680_v1 }
 0x467   :  { %3350 = vrcp.f32 %v2717_v52  ;;  %v2990_v55 = vmul.f32 -1.442695, %v2689_v27 }
 0x468   :  { %3352 = vpow2.f32 %v2989_v10  ;;  %v2988_v28 = vmul.f32 -1.442695, %v2681_v54 }
 0x469   :  { %3354 = vpow2.f32 %v2987_v53 }
 0x46a   :  { %3356 = vpow2.f32 %v2990_v55 }
 0x46b   :  { %3358 = vpow2.f32 %v2988_v28 }
 0x46e   :  { %v3345_v47 = vpop.eup %3344 }
 0x46f   :  { %v3347_v57 = vpop.eup %3346  ;;  %2742 = vst [vmem:[#allocation14 + $0x10] sm:$0xff] %v3345_v47 }
 0x470   :  { %v3349_v46 = vpop.eup %3348  ;;  %2740 = vst [vmem:[#allocation14] sm:$0xff] %v3347_v57 }
 0x471   :  { %v3351_v58 = vpop.eup %3350  ;;  %2743 = vst [vmem:[#allocation14 + $0x18] sm:$0xff] %v3349_v46 }
 0x472   :  { %v3353_v59 = vpop.eup %3352  ;;  %2741 = vst [vmem:[#allocation14 + $0x8] sm:$0xff] %v3351_v58 }
 0x473   :  { %v3355_v41 = vpop.eup %3354  ;;  %v2722_v44 = vadd.f32 1.0, %v3353_v59 }
 0x474   :  { %v3357_v61 = vpop.eup %3356  ;;  %v2720_v62 = vadd.f32 1.0, %v3355_v41 }
 0x475   :  { %v3359_v0 = vpop.eup %3358  ;;  %3360 = vrcp.f32 %v2722_v44  ;;  %v2723_v2 = vadd.f32 1.0, %v3357_v61 }
 0x476   :  { %3362 = vrcp.f32 %v2720_v62  ;;  %v2721_v3 = vadd.f32 1.0, %v3359_v0 }
 0x477   :  { %3364 = vrcp.f32 %v2723_v2 }
 0x478   :  { %3366 = vrcp.f32 %v2721_v3 }
 0x47f   :  { %v3361_v4 = vpop.eup %3360 }
 0x480   :  { %v3363_v11 = vpop.eup %3362  ;;  %2746 = vst [vmem:[#allocation14 + $0x30] sm:$0xff] %v3361_v4 }
 0x481   :  { %v3365_v45 = vpop.eup %3364  ;;  %2744 = vst [vmem:[#allocation14 + $0x20] sm:$0xff] %v3363_v11 }
 0x482   :  { %v3367_v12 = vpop.eup %3366  ;;  %2747 = vst [vmem:[#allocation14 + $0x38] sm:$0xff] %v3365_v45 }
 0x483   :  { %2745 = vst [vmem:[#allocation14 + $0x28] sm:$0xff] %v3367_v12 }
 0x484   :  { %3511 = shalt.err (!%p3508_p10)
}
 0x485   :  { %s3512_s27 = scalar_lea.hbm %s3902_s9, 1024 }
 0x486   :  { %p3513_p11 = scmp.ne.s32.totalorder %s3902_s9, %s3512_s27  ;;  %p3516_p12 = scmp.lt.u32.totalorder %s3512_s27, %s3902_s9 }
 0x488   :  { %p3518_p13 = pnand %p3516_p12, %p3513_p11 }
 0x48a   :  { %3521 = shalt.err (!%p3518_p13)
}
 0x48b   :  { %2759 = dma.vmem_to_hbm [thread:$0]  %s2754_s22, 1024, %s3902_s9, [#allocation5], %s3539_s3, %s3539_s3, %s3540_s24  }
 0x48c   :  { %3530 = dma.done.wait [#allocation5], 1024  }
 0x48d   :  { %3531 = vsyncadd [#allocation5], 4294966272 }
 0x48e   :  { %2763 = vsyncpa [#allocation4], 1 }
 0x48f   :  { %2764 = vsyncpa [#allocation7], 1 }
 0x490   :  { %2765 = vsyncpa [#allocation10], 1 }
 0x491   :  { %2766 = vsyncpa [#allocation13], 1 }
 0x492   :  { %2767 = vsyncpa [#allocation5], 1 }

</bundles_post_ra>
